<compile_context>
chip_gen: v6e
topology: v6e:2x2x1
jax: 0.10.0
libtpu: 0.0.40
codegen_flags: <defaults>
</compile_context>

<pallas_src>
import jax
import jax.numpy as jnp
import numpy as np
from jax.experimental import pallas as pl
from jax.experimental.pallas import tpu as pltpu


# --------------------------- fused kernel factory ---------------------------

def _make_decoder_kernel(*, N, H, Ho, Wo, Cup, Cskip, Cmid, Cout,
                         pad_top, needs_pad, eps=1e-5):
    Hp = Ho + 2                       # +1 zero row above / below each image
    Lup, Lsk = Wo * Cup, Wo * Cskip
    Lcat = Lup + Lsk
    Lmid, Lout = Wo * Cmid, Wo * Cout
    inv_n = 1.0 / float(N * Ho * Wo)  # BatchNorm batch size (biased variance)

    def chan_pool(c, L):
        # P[i, j] = (i % c == j % c): one MXU pass turns a per-lane row-sum into
        # per-channel totals broadcast back over the W positions packed in lanes.
        ri = jax.lax.broadcasted_iota(jnp.int32, (L, L), 0)
        ci = jax.lax.broadcasted_iota(jnp.int32, (L, L), 1)
        return (ri % c == ci % c).astype(jnp.float32)

    def kernel(x_ref, skip_ref, mup_ref, w1_ref, w2_ref, prm_ref, o_ref,
               cat_scr, h_scr):
        f32 = jnp.float32

        # ---- ConvTranspose2d(k=2, s=2): one GEMM per output-row parity ------
        up_b = prm_ref[pl.ds(0, 1), pl.ds(0, Lup)]
        a_par = [jnp.dot(x_ref[...], mup_ref[p], preferred_element_type=f32)
                 + up_b for p in range(2)]               # 2 x (N*H, Lup)

        # ---- assemble the padded "cat" grid in VMEM (never touches HBM) -----
        # cat_scr rows n*Hp and (n+1)*Hp-1 are the conv zero-pad rows; lanes
        # [0:Lup] hold the upsampled features, [Lup:Lcat] the skip features.
        # W-direction padding is folded into the banded weights -> no zero lanes.
        if needs_pad:
            # F.pad path: rows / columns not covered by `up` must stay zero.
            cat_scr[...] = jnp.zeros((N * Hp, Lcat), f32)
        else:
            for n in range(N):        # zero only the 2 conv-pad rows per image
                cat_scr[pl.ds(n * Hp, 1), :] = jnp.zeros((1, Lcat), f32)
                cat_scr[pl.ds((n + 1) * Hp - 1, 1), :] = jnp.zeros((1, Lcat), f32)

        for n in range(N):            # interleave the 2 row parities of `up`
            for h in range(H):
                r = n * Hp + 1 + pad_top + 2 * h
                i = n * H + h
                cat_scr[pl.ds(r, 1), pl.ds(0, Lup)] = a_par[0][i:i + 1, :]
                cat_scr[pl.ds(r + 1, 1), pl.ds(0, Lup)] = a_par[1][i:i + 1, :]

        for n in range(N):            # skip connection -> its own lane block
            cat_scr[pl.ds(n * Hp + 1, Ho), pl.ds(Lup, Lsk)] = \
                skip_ref[pl.ds(n * Ho, Ho), :]

        # ---- conv1: 3 row-shifted banded MXU passes per image ---------------
        # (conv bias dropped: a per-channel constant cancels in training BN)
        acc1 = []
        for n in range(N):
            a = jnp.zeros((Ho, Lmid), f32)
            for dy in range(3):
                a = a + jnp.dot(cat_scr[pl.ds(n * Hp + dy, Ho), :], w1_ref[dy],
                                preferred_element_type=f32)
            acc1.append(a)

        # ---- BN1 (batch stats, single pass via E[x^2]-mean^2) + ReLU --------
        pool_mid = chan_pool(Cmid, Lmid)
        s1 = sum(jnp.sum(a, axis=0, keepdims=True) for a in acc1)
        q1 = sum(jnp.sum(a * a, axis=0, keepdims=True) for a in acc1)
        mean1 = jnp.dot(s1, pool_mid, preferred_element_type=f32) * inv_n
        var1 = jnp.dot(q1, pool_mid, preferred_element_type=f32) * inv_n \
            - mean1 * mean1
        g1 = prm_ref[pl.ds(1, 1), pl.ds(0, Lmid)]
        b1 = prm_ref[pl.ds(2, 1), pl.ds(0, Lmid)]
        scale1 = jax.lax.rsqrt(var1 + eps) * g1
        shift1 = b1 - mean1 * scale1

        # stage BN1/ReLU output on the padded grid; only pad rows are zeroed.
        for n in range(N):
            h_scr[pl.ds(n * Hp, 1), :] = jnp.zeros((1, Lmid), f32)
            h_scr[pl.ds((n + 1) * Hp - 1, 1), :] = jnp.zeros((1, Lmid), f32)
            h_scr[pl.ds(n * Hp + 1, Ho), :] = \
                jnp.maximum(acc1[n] * scale1 + shift1, 0.0)

        # ---- conv2 -----------------------------------------------------------
        acc2 = []
        for n in range(N):
            a = jnp.zeros((Ho, Lout), f32)
            for dy in range(3):
                a = a + jnp.dot(h_scr[pl.ds(n * Hp + dy, Ho), :], w2_ref[dy],
                                preferred_element_type=f32)
            acc2.append(a)

        # ---- BN2 + ReLU, straight into the lane-dense valid-only output -----
        pool_out = pool_mid if (Cout == Cmid and Lout == Lmid) \
            else chan_pool(Cout, Lout)
        s2 = sum(jnp.sum(a, axis=0, keepdims=True) for a in acc2)
        q2 = sum(jnp.sum(a * a, axis=0, keepdims=True) for a in acc2)
        mean2 = jnp.dot(s2, pool_out, preferred_element_type=f32) * inv_n
        var2 = jnp.dot(q2, pool_out, preferred_element_type=f32) * inv_n \
            - mean2 * mean2
        g2 = prm_ref[pl.ds(3, 1), pl.ds(0, Lout)]
        b2 = prm_ref[pl.ds(4, 1), pl.ds(0, Lout)]
        scale2 = jax.lax.rsqrt(var2 + eps) * g2
        shift2 = b2 - mean2 * scale2
        for n in range(N):
            o_ref[pl.ds(n * Ho, Ho), :] = \
                jnp.maximum(acc2[n] * scale2 + shift2, 0.0)

    return kernel


# ------------------------------ pallas_call wrapper -------------------------

def _fused_decoder_block(x_rows, skip_rows, mup, w1b, w2b, prm, *,
                         N, H, Ho, Wo, Cup, Cskip, Cmid, Cout,
                         pad_top, needs_pad):
    Hp = Ho + 2
    Lcat = Wo * (Cup + Cskip)
    Lmid, Lout = Wo * Cmid, Wo * Cout
    kernel = _make_decoder_kernel(N=N, H=H, Ho=Ho, Wo=Wo, Cup=Cup, Cskip=Cskip,
                                  Cmid=Cmid, Cout=Cout, pad_top=pad_top,
                                  needs_pad=needs_pad)

    def full(shape):
        nd = len(shape)
        return pl.BlockSpec(shape, lambda i, _nd=nd: (0,) * _nd)

    return pl.pallas_call(
        kernel,
        out_shape=jax.ShapeDtypeStruct((N * Ho, Lout), jnp.float32),
        grid=(1,),
        in_specs=[full(x_rows.shape), full(skip_rows.shape), full(mup.shape),
                  full(w1b.shape), full(w2b.shape), full(prm.shape)],
        out_specs=full((N * Ho, Lout)),
        scratch_shapes=[pltpu.VMEM((N * Hp, Lcat), jnp.float32),   # cat grid
                        pltpu.VMEM((N * Hp, Lmid), jnp.float32)],  # BN1/ReLU
        compiler_params=pltpu.CompilerParams(
            dimension_semantics=("arbitrary",)),
    )(x_rows, skip_rows, mup, w1b, w2b, prm)


# ------------------------------- forward pass -------------------------------

def decoder_block_forward(params, x_nchw, skip_nchw):
    """DecoderBlock.forward (bilinear=False), NCHW in / NCHW out."""
    x = jnp.transpose(x_nchw, (0, 2, 3, 1)).astype(jnp.float32)        # (N,H,W,Ci)
    skip = jnp.transpose(skip_nchw, (0, 2, 3, 1)).astype(jnp.float32)  # (N,Ho,Wo,Cs)
    N, H, W, Cin = x.shape
    _, Ho, Wo, Cskip = skip.shape
    Cup = params["up_w"].shape[1]
    Cmid = params["c1_w"].shape[0]
    Cout = params["c2_w"].shape[0]
    dY, dX = Ho - 2 * H, Wo - 2 * W          # F.pad amounts (>= 0 in UNet)
    pad_top, pad_left = dY // 2, dX // 2
    needs_pad = (dY != 0) or (dX != 0)

    Lup, Lmid, Lout = Wo * Cup, Wo * Cmid, Wo * Cout

    # ---- weight preprocessing (tiny, amortizable across calls) -------------
    # ConvTranspose2d(k=2,s=2) -> two "output row parity" GEMM matrices that
    # also bake in the F.pad column offset.
    up_w = params["up_w"].astype(jnp.float32)             # (Cin, Cup, 2, 2)
    scat = []
    for dj in range(2):
        s = np.zeros((W, Wo), np.float32)
        for w in range(W):
            s[w, 2 * w + dj + pad_left] = 1.0
        scat.append(s)
    mup = jnp.stack(
        [sum(jnp.kron(scat[dj], up_w[:, :, p, dj]) for dj in range(2))
         for p in range(2)], axis=0)                      # (2, W*Cin, Lup)

    def conv_band(w_oihw):
        # 3x3 conv (padding=1) along W folded into tri-block-banded matrices,
        # one per dy, with the W zero padding handled by band truncation.
        wt = jnp.transpose(w_oihw, (2, 3, 1, 0)).astype(jnp.float32)  # (3,3,I,O)
        return jnp.stack(
            [sum(jnp.kron(np.eye(Wo, k=1 - kx, dtype=np.float32), wt[dy, kx])
                 for kx in range(3)) for dy in range(3)], axis=0)

    w1 = params["c1_w"].astype(jnp.float32)               # (Cmid, Cup+Cskip, 3, 3)
    w1b = jnp.concatenate([conv_band(w1[:, :Cup]),         # up-lane block
                           conv_band(w1[:, Cup:])],        # skip-lane block
                          axis=1)                          # (3, Lup+Lsk, Lmid)
    w2b = conv_band(params["c2_w"].astype(jnp.float32))    # (3, Lmid, Lout)

    # pack every per-channel row parameter into a single (5, Lc) input stream
    Lc = max(Lup, Lmid, Lout)

    def lane_row(vec, L):
        row = jnp.tile(vec.astype(jnp.float32), Wo)
        return jnp.pad(row, (0, Lc - L)).reshape(1, Lc)

    cover = np.zeros((Wo, 1), np.float32)
    cover[pad_left:pad_left + 2 * W, 0] = 1.0   # up bias only where `up` lands
    upb = (cover * params["up_b"].astype(jnp.float32)[None, :]).reshape(1, Lup)
    upb = jnp.pad(upb, ((0, 0), (0, Lc - Lup)))
    prm = jnp.concatenate(
        [upb,
         lane_row(params["bn1_g"], Lmid), lane_row(params["bn1_b"], Lmid),
         lane_row(params["bn2_g"], Lout), lane_row(params["bn2_b"], Lout)],
        axis=0)                                            # (5, Lc)
    # conv biases c1_b / c2_b intentionally unused: they cancel in training BN.

    # ---- activations: rows = image rows, lanes = (W x C) --------------------
    x_rows = x.reshape(N * H, W * Cin)
    skip_rows = skip.reshape(N * Ho, Wo * Cskip)

    out_rows = _fused_decoder_block(
        x_rows, skip_rows, mup, w1b, w2b, prm,
        N=N, H=H, Ho=Ho, Wo=Wo, Cup=Cup, Cskip=Cskip, Cmid=Cmid, Cout=Cout,
        pad_top=pad_top, needs_pad=needs_pad)

    out = out_rows.reshape(N, Ho, Wo, Cout)
    return jnp.transpose(out, (0, 3, 1, 2))


# ------------------------- pure-JAX reference check ------------------------

def reference_forward(params, x, skip):
    N, Cin, H, W = x.shape
    Cout = params["up_w"].shape[1]
    up = jnp.zeros((N, Cout, 2 * H, 2 * W), jnp.float32)
    for di in range(2):
        for dj in range(2):
            v = jnp.einsum("nchw,co->nohw", x, params["up_w"][:, :, di, dj])
            up = up.at[:, :, di::2, dj::2].set(v)
    up = up + params["up_b"][None, :, None, None]
    cat = jnp.concatenate([up, skip], axis=1)

    def conv_bn_relu(h, w, b, g, bt):
        h = jax.lax.conv_general_dilated(
            h, w, (1, 1), ((1, 1), (1, 1)),
            dimension_numbers=("NCHW", "OIHW", "NCHW")) + b[None, :, None, None]
        mean = jnp.mean(h, axis=(0, 2, 3), keepdims=True)
        var = jnp.mean((h - mean) ** 2, axis=(0, 2, 3), keepdims=True)
        h = (h - mean) * jax.lax.rsqrt(var + 1e-5) * g[None, :, None, None] \
            + bt[None, :, None, None]
        return jnp.maximum(h, 0.0)

    h = conv_bn_relu(cat, params["c1_w"], params["c1_b"],
                     params["bn1_g"], params["bn1_b"])
    h = conv_bn_relu(h, params["c2_w"], params["c2_b"],
                     params["bn2_g"], params["bn2_b"])
    return h


# ----------------------------------- main -----------------------------------

if __name__ == "__main__":
    # DecoderBlock(in_channels=8, out_channels=8, bilinear=False)
    in_ch, out_ch = 8, 8
    N, H, W = 2, 8, 8                 # x: (2, 8, 8, 8)
    skip_ch = in_ch // 2              # skip: (2, 4, 16, 16)
    conv_in = out_ch + in_ch // 2     # 12 channels after concat

    key = jax.random.PRNGKey(0)
    ks = jax.random.split(key, 8)
    params = {
        "up_w": 0.1 * jax.random.normal(ks[0], (in_ch, out_ch, 2, 2), jnp.float32),
        "up_b": 0.1 * jax.random.normal(ks[1], (out_ch,), jnp.float32),
        "c1_w": 0.1 * jax.random.normal(ks[2], (out_ch, conv_in, 3, 3), jnp.float32),
        "c1_b": 0.1 * jax.random.normal(ks[3], (out_ch,), jnp.float32),
        "bn1_g": jnp.ones((out_ch,), jnp.float32),
        "bn1_b": jnp.zeros((out_ch,), jnp.float32),
        "c2_w": 0.1 * jax.random.normal(ks[4], (out_ch, out_ch, 3, 3), jnp.float32),
        "c2_b": 0.1 * jax.random.normal(ks[5], (out_ch,), jnp.float32),
        "bn2_g": jnp.ones((out_ch,), jnp.float32),
        "bn2_b": jnp.zeros((out_ch,), jnp.float32),
    }

    x = jax.random.normal(ks[6], (N, in_ch, H, W), jnp.float32)
    skip = jax.random.normal(ks[7], (N, skip_ch, 2 * H, 2 * W), jnp.float32)

    fwd = jax.jit(decoder_block_forward)
    out = jax.block_until_ready(fwd(params, x, skip))

    ref = jax.block_until_ready(reference_forward(params, x, skip))
    assert out.shape == (N, out_ch, 2 * H, 2 * W), out.shape
    np.testing.assert_allclose(np.asarray(out), np.asarray(ref),
                               rtol=5e-4, atol=5e-4)

    print("KERNEL_OK")
</pallas_src>

<mosaic_0001>
module attributes {stable_mosaic.version = 11 : i64} {
  func.func @kernel(%arg0: i32, %arg1: memref<16x64xf32, #tpu.memory_space<vmem>>, %arg2: memref<32x64xf32, #tpu.memory_space<vmem>>, %arg3: memref<2x64x128xf32, #tpu.memory_space<vmem>>, %arg4: memref<3x192x128xf32, #tpu.memory_space<vmem>>, %arg5: memref<3x128x128xf32, #tpu.memory_space<vmem>>, %arg6: memref<5x128xf32, #tpu.memory_space<vmem>>, %arg7: memref<32x128xf32, #tpu.memory_space<vmem>>, %arg8: memref<36x192xf32, #tpu.memory_space<vmem>>, %arg9: memref<36x128xf32, #tpu.memory_space<vmem>>) attributes {dimension_semantics = [#tpu.dimension_semantics<arbitrary>], iteration_bounds = array<i64: 1>, scalar_prefetch = 0 : i64, scratch_operands = 2 : i64, tpu.core_type = #tpu.core_type<tc>, window_params = [{pipeline_mode = #tpu.pipeline_mode<synchronous>, transform_indices = @transform_0, window_bounds = array<i64: 16, 64>}, {pipeline_mode = #tpu.pipeline_mode<synchronous>, transform_indices = @transform_1, window_bounds = array<i64: 32, 64>}, {pipeline_mode = #tpu.pipeline_mode<synchronous>, transform_indices = @transform_2, window_bounds = array<i64: 2, 64, 128>}, {pipeline_mode = #tpu.pipeline_mode<synchronous>, transform_indices = @transform_3, window_bounds = array<i64: 3, 192, 128>}, {pipeline_mode = #tpu.pipeline_mode<synchronous>, transform_indices = @transform_4, window_bounds = array<i64: 3, 128, 128>}, {pipeline_mode = #tpu.pipeline_mode<synchronous>, transform_indices = @transform_5, window_bounds = array<i64: 5, 128>}, {pipeline_mode = #tpu.pipeline_mode<synchronous>, transform_indices = @transform_6, window_bounds = array<i64: 32, 128>}]} {
    %c0 = arith.constant 0 : index
    %c0_0 = arith.constant 0 : index
    %0 = vector.load %arg6[%c0, %c0_0] : memref<5x128xf32, #tpu.memory_space<vmem>>, vector<1x128xf32>
    %c0_1 = arith.constant 0 : index
    %c0_2 = arith.constant 0 : index
    %1 = vector.load %arg1[%c0_1, %c0_2] : memref<16x64xf32, #tpu.memory_space<vmem>>, vector<16x64xf32>
    %c0_3 = arith.constant 0 : index
    %c0_4 = arith.constant 0 : index
    %c0_5 = arith.constant 0 : index
    %2 = vector.load %arg3[%c0_3, %c0_4, %c0_5] : memref<2x64x128xf32, #tpu.memory_space<vmem>>, vector<1x64x128xf32>
    %3 = vector.shape_cast %2 : vector<1x64x128xf32> to vector<64x128xf32>
    %cst = arith.constant dense<0.000000e+00> : vector<16x128xf32>
    %4 = tpu.matmul %1, %3, %cst {dimension_numbers = #tpu.dot_dimension_numbers<[1], [0], [0], [1], [0, 0, 1, 1], [], []>} : vector<16x64xf32>, vector<64x128xf32>, vector<16x128xf32> -> vector<16x128xf32>
    %5 = vector.broadcast %0 : vector<1x128xf32> to vector<16x128xf32>
    %6 = arith.addf %4, %5 : vector<16x128xf32>
    %c0_6 = arith.constant 0 : index
    %c0_7 = arith.constant 0 : index
    %7 = vector.load %arg1[%c0_6, %c0_7] : memref<16x64xf32, #tpu.memory_space<vmem>>, vector<16x64xf32>
    %c1 = arith.constant 1 : index
    %c0_8 = arith.constant 0 : index
    %c0_9 = arith.constant 0 : index
    %8 = vector.load %arg3[%c1, %c0_8, %c0_9] : memref<2x64x128xf32, #tpu.memory_space<vmem>>, vector<1x64x128xf32>
    %9 = vector.shape_cast %8 : vector<1x64x128xf32> to vector<64x128xf32>
    %cst_10 = arith.constant dense<0.000000e+00> : vector<16x128xf32>
    %10 = tpu.matmul %7, %9, %cst_10 {dimension_numbers = #tpu.dot_dimension_numbers<[1], [0], [0], [1], [0, 0, 1, 1], [], []>} : vector<16x64xf32>, vector<64x128xf32>, vector<16x128xf32> -> vector<16x128xf32>
    %11 = vector.broadcast %0 : vector<1x128xf32> to vector<16x128xf32>
    %12 = arith.addf %10, %11 : vector<16x128xf32>
    %cst_11 = arith.constant 0.000000e+00 : f32
    %13 = vector.broadcast %cst_11 : f32 to vector<1x192xf32>
    %c0_12 = arith.constant 0 : index
    %c0_13 = arith.constant 0 : index
    %14 = vector.load %arg8[%c0_12, %c0_13] : memref<36x192xf32, #tpu.memory_space<vmem>>, vector<1x192xf32>
    tpu.vector_store %arg8[%c0_12, %c0_13], %13 {strides = array<i32>} : memref<36x192xf32, #tpu.memory_space<vmem>>, vector<1x192xf32>,
    %cst_14 = arith.constant 0.000000e+00 : f32
    %15 = vector.broadcast %cst_14 : f32 to vector<1x192xf32>
    %c17 = arith.constant 17 : index
    %c0_15 = arith.constant 0 : index
    %16 = vector.load %arg8[%c17, %c0_15] : memref<36x192xf32, #tpu.memory_space<vmem>>, vector<1x192xf32>
    tpu.vector_store %arg8[%c17, %c0_15], %15 {strides = array<i32>} : memref<36x192xf32, #tpu.memory_space<vmem>>, vector<1x192xf32>,
    %cst_16 = arith.constant 0.000000e+00 : f32
    %17 = vector.broadcast %cst_16 : f32 to vector<1x192xf32>
    %c18 = arith.constant 18 : index
    %c0_17 = arith.constant 0 : index
    %18 = vector.load %arg8[%c18, %c0_17] : memref<36x192xf32, #tpu.memory_space<vmem>>, vector<1x192xf32>
    tpu.vector_store %arg8[%c18, %c0_17], %17 {strides = array<i32>} : memref<36x192xf32, #tpu.memory_space<vmem>>, vector<1x192xf32>,
    %cst_18 = arith.constant 0.000000e+00 : f32
    %19 = vector.broadcast %cst_18 : f32 to vector<1x192xf32>
    %c35 = arith.constant 35 : index
    %c0_19 = arith.constant 0 : index
    %20 = vector.load %arg8[%c35, %c0_19] : memref<36x192xf32, #tpu.memory_space<vmem>>, vector<1x192xf32>
    tpu.vector_store %arg8[%c35, %c0_19], %19 {strides = array<i32>} : memref<36x192xf32, #tpu.memory_space<vmem>>, vector<1x192xf32>,
    %21 = vector.extract_strided_slice %6 {offsets = [0, 0], sizes = [1, 128], strides = [1, 1]} : vector<16x128xf32> to vector<1x128xf32>
    %c1_20 = arith.constant 1 : index
    %c0_21 = arith.constant 0 : index
    %22 = vector.load %arg8[%c1_20, %c0_21] : memref<36x192xf32, #tpu.memory_space<vmem>>, vector<1x128xf32>
    tpu.vector_store %arg8[%c1_20, %c0_21], %21 {strides = array<i32>} : memref<36x192xf32, #tpu.memory_space<vmem>>, vector<1x128xf32>,
    %23 = vector.extract_strided_slice %12 {offsets = [0, 0], sizes = [1, 128], strides = [1, 1]} : vector<16x128xf32> to vector<1x128xf32>
    %c2 = arith.constant 2 : index
    %c0_22 = arith.constant 0 : index
    %24 = vector.load %arg8[%c2, %c0_22] : memref<36x192xf32, #tpu.memory_space<vmem>>, vector<1x128xf32>
    tpu.vector_store %arg8[%c2, %c0_22], %23 {strides = array<i32>} : memref<36x192xf32, #tpu.memory_space<vmem>>, vector<1x128xf32>,
    %25 = vector.extract_strided_slice %6 {offsets = [1, 0], sizes = [1, 128], strides = [1, 1]} : vector<16x128xf32> to vector<1x128xf32>
    %c3 = arith.constant 3 : index
    %c0_23 = arith.constant 0 : index
    %26 = vector.load %arg8[%c3, %c0_23] : memref<36x192xf32, #tpu.memory_space<vmem>>, vector<1x128xf32>
    tpu.vector_store %arg8[%c3, %c0_23], %25 {strides = array<i32>} : memref<36x192xf32, #tpu.memory_space<vmem>>, vector<1x128xf32>,
    %27 = vector.extract_strided_slice %12 {offsets = [1, 0], sizes = [1, 128], strides = [1, 1]} : vector<16x128xf32> to vector<1x128xf32>
    %c4 = arith.constant 4 : index
    %c0_24 = arith.constant 0 : index
    %28 = vector.load %arg8[%c4, %c0_24] : memref<36x192xf32, #tpu.memory_space<vmem>>, vector<1x128xf32>
    tpu.vector_store %arg8[%c4, %c0_24], %27 {strides = array<i32>} : memref<36x192xf32, #tpu.memory_space<vmem>>, vector<1x128xf32>,
    %29 = vector.extract_strided_slice %6 {offsets = [2, 0], sizes = [1, 128], strides = [1, 1]} : vector<16x128xf32> to vector<1x128xf32>
    %c5 = arith.constant 5 : index
    %c0_25 = arith.constant 0 : index
    %30 = vector.load %arg8[%c5, %c0_25] : memref<36x192xf32, #tpu.memory_space<vmem>>, vector<1x128xf32>
    tpu.vector_store %arg8[%c5, %c0_25], %29 {strides = array<i32>} : memref<36x192xf32, #tpu.memory_space<vmem>>, vector<1x128xf32>,
    %31 = vector.extract_strided_slice %12 {offsets = [2, 0], sizes = [1, 128], strides = [1, 1]} : vector<16x128xf32> to vector<1x128xf32>
    %c6 = arith.constant 6 : index
    %c0_26 = arith.constant 0 : index
    %32 = vector.load %arg8[%c6, %c0_26] : memref<36x192xf32, #tpu.memory_space<vmem>>, vector<1x128xf32>
    tpu.vector_store %arg8[%c6, %c0_26], %31 {strides = array<i32>} : memref<36x192xf32, #tpu.memory_space<vmem>>, vector<1x128xf32>,
    %33 = vector.extract_strided_slice %6 {offsets = [3, 0], sizes = [1, 128], strides = [1, 1]} : vector<16x128xf32> to vector<1x128xf32>
    %c7 = arith.constant 7 : index
    %c0_27 = arith.constant 0 : index
    %34 = vector.load %arg8[%c7, %c0_27] : memref<36x192xf32, #tpu.memory_space<vmem>>, vector<1x128xf32>
    tpu.vector_store %arg8[%c7, %c0_27], %33 {strides = array<i32>} : memref<36x192xf32, #tpu.memory_space<vmem>>, vector<1x128xf32>,
    %35 = vector.extract_strided_slice %12 {offsets = [3, 0], sizes = [1, 128], strides = [1, 1]} : vector<16x128xf32> to vector<1x128xf32>
    %c8 = arith.constant 8 : index
    %c0_28 = arith.constant 0 : index
    %36 = vector.load %arg8[%c8, %c0_28] : memref<36x192xf32, #tpu.memory_space<vmem>>, vector<1x128xf32>
    tpu.vector_store %arg8[%c8, %c0_28], %35 {strides = array<i32>} : memref<36x192xf32, #tpu.memory_space<vmem>>, vector<1x128xf32>,
    %37 = vector.extract_strided_slice %6 {offsets = [4, 0], sizes = [1, 128], strides = [1, 1]} : vector<16x128xf32> to vector<1x128xf32>
    %c9 = arith.constant 9 : index
    %c0_29 = arith.constant 0 : index
    %38 = vector.load %arg8[%c9, %c0_29] : memref<36x192xf32, #tpu.memory_space<vmem>>, vector<1x128xf32>
    tpu.vector_store %arg8[%c9, %c0_29], %37 {strides = array<i32>} : memref<36x192xf32, #tpu.memory_space<vmem>>, vector<1x128xf32>,
    %39 = vector.extract_strided_slice %12 {offsets = [4, 0], sizes = [1, 128], strides = [1, 1]} : vector<16x128xf32> to vector<1x128xf32>
    %c10 = arith.constant 10 : index
    %c0_30 = arith.constant 0 : index
    %40 = vector.load %arg8[%c10, %c0_30] : memref<36x192xf32, #tpu.memory_space<vmem>>, vector<1x128xf32>
    tpu.vector_store %arg8[%c10, %c0_30], %39 {strides = array<i32>} : memref<36x192xf32, #tpu.memory_space<vmem>>, vector<1x128xf32>,
    %41 = vector.extract_strided_slice %6 {offsets = [5, 0], sizes = [1, 128], strides = [1, 1]} : vector<16x128xf32> to vector<1x128xf32>
    %c11 = arith.constant 11 : index
    %c0_31 = arith.constant 0 : index
    %42 = vector.load %arg8[%c11, %c0_31] : memref<36x192xf32, #tpu.memory_space<vmem>>, vector<1x128xf32>
    tpu.vector_store %arg8[%c11, %c0_31], %41 {strides = array<i32>} : memref<36x192xf32, #tpu.memory_space<vmem>>, vector<1x128xf32>,
    %43 = vector.extract_strided_slice %12 {offsets = [5, 0], sizes = [1, 128], strides = [1, 1]} : vector<16x128xf32> to vector<1x128xf32>
    %c12 = arith.constant 12 : index
    %c0_32 = arith.constant 0 : index
    %44 = vector.load %arg8[%c12, %c0_32] : memref<36x192xf32, #tpu.memory_space<vmem>>, vector<1x128xf32>
    tpu.vector_store %arg8[%c12, %c0_32], %43 {strides = array<i32>} : memref<36x192xf32, #tpu.memory_space<vmem>>, vector<1x128xf32>,
    %45 = vector.extract_strided_slice %6 {offsets = [6, 0], sizes = [1, 128], strides = [1, 1]} : vector<16x128xf32> to vector<1x128xf32>
    %c13 = arith.constant 13 : index
    %c0_33 = arith.constant 0 : index
    %46 = vector.load %arg8[%c13, %c0_33] : memref<36x192xf32, #tpu.memory_space<vmem>>, vector<1x128xf32>
    tpu.vector_store %arg8[%c13, %c0_33], %45 {strides = array<i32>} : memref<36x192xf32, #tpu.memory_space<vmem>>, vector<1x128xf32>,
    %47 = vector.extract_strided_slice %12 {offsets = [6, 0], sizes = [1, 128], strides = [1, 1]} : vector<16x128xf32> to vector<1x128xf32>
    %c14 = arith.constant 14 : index
    %c0_34 = arith.constant 0 : index
    %48 = vector.load %arg8[%c14, %c0_34] : memref<36x192xf32, #tpu.memory_space<vmem>>, vector<1x128xf32>
    tpu.vector_store %arg8[%c14, %c0_34], %47 {strides = array<i32>} : memref<36x192xf32, #tpu.memory_space<vmem>>, vector<1x128xf32>,
    %49 = vector.extract_strided_slice %6 {offsets = [7, 0], sizes = [1, 128], strides = [1, 1]} : vector<16x128xf32> to vector<1x128xf32>
    %c15 = arith.constant 15 : index
    %c0_35 = arith.constant 0 : index
    %50 = vector.load %arg8[%c15, %c0_35] : memref<36x192xf32, #tpu.memory_space<vmem>>, vector<1x128xf32>
    tpu.vector_store %arg8[%c15, %c0_35], %49 {strides = array<i32>} : memref<36x192xf32, #tpu.memory_space<vmem>>, vector<1x128xf32>,
    %51 = vector.extract_strided_slice %12 {offsets = [7, 0], sizes = [1, 128], strides = [1, 1]} : vector<16x128xf32> to vector<1x128xf32>
    %c16 = arith.constant 16 : index
    %c0_36 = arith.constant 0 : index
    %52 = vector.load %arg8[%c16, %c0_36] : memref<36x192xf32, #tpu.memory_space<vmem>>, vector<1x128xf32>
    tpu.vector_store %arg8[%c16, %c0_36], %51 {strides = array<i32>} : memref<36x192xf32, #tpu.memory_space<vmem>>, vector<1x128xf32>,
    %53 = vector.extract_strided_slice %6 {offsets = [8, 0], sizes = [1, 128], strides = [1, 1]} : vector<16x128xf32> to vector<1x128xf32>
    %c19 = arith.constant 19 : index
    %c0_37 = arith.constant 0 : index
    %54 = vector.load %arg8[%c19, %c0_37] : memref<36x192xf32, #tpu.memory_space<vmem>>, vector<1x128xf32>
    tpu.vector_store %arg8[%c19, %c0_37], %53 {strides = array<i32>} : memref<36x192xf32, #tpu.memory_space<vmem>>, vector<1x128xf32>,
    %55 = vector.extract_strided_slice %12 {offsets = [8, 0], sizes = [1, 128], strides = [1, 1]} : vector<16x128xf32> to vector<1x128xf32>
    %c20 = arith.constant 20 : index
    %c0_38 = arith.constant 0 : index
    %56 = vector.load %arg8[%c20, %c0_38] : memref<36x192xf32, #tpu.memory_space<vmem>>, vector<1x128xf32>
    tpu.vector_store %arg8[%c20, %c0_38], %55 {strides = array<i32>} : memref<36x192xf32, #tpu.memory_space<vmem>>, vector<1x128xf32>,
    %57 = vector.extract_strided_slice %6 {offsets = [9, 0], sizes = [1, 128], strides = [1, 1]} : vector<16x128xf32> to vector<1x128xf32>
    %c21 = arith.constant 21 : index
    %c0_39 = arith.constant 0 : index
    %58 = vector.load %arg8[%c21, %c0_39] : memref<36x192xf32, #tpu.memory_space<vmem>>, vector<1x128xf32>
    tpu.vector_store %arg8[%c21, %c0_39], %57 {strides = array<i32>} : memref<36x192xf32, #tpu.memory_space<vmem>>, vector<1x128xf32>,
    %59 = vector.extract_strided_slice %12 {offsets = [9, 0], sizes = [1, 128], strides = [1, 1]} : vector<16x128xf32> to vector<1x128xf32>
    %c22 = arith.constant 22 : index
    %c0_40 = arith.constant 0 : index
    %60 = vector.load %arg8[%c22, %c0_40] : memref<36x192xf32, #tpu.memory_space<vmem>>, vector<1x128xf32>
    tpu.vector_store %arg8[%c22, %c0_40], %59 {strides = array<i32>} : memref<36x192xf32, #tpu.memory_space<vmem>>, vector<1x128xf32>,
    %61 = vector.extract_strided_slice %6 {offsets = [10, 0], sizes = [1, 128], strides = [1, 1]} : vector<16x128xf32> to vector<1x128xf32>
    %c23 = arith.constant 23 : index
    %c0_41 = arith.constant 0 : index
    %62 = vector.load %arg8[%c23, %c0_41] : memref<36x192xf32, #tpu.memory_space<vmem>>, vector<1x128xf32>
    tpu.vector_store %arg8[%c23, %c0_41], %61 {strides = array<i32>} : memref<36x192xf32, #tpu.memory_space<vmem>>, vector<1x128xf32>,
    %63 = vector.extract_strided_slice %12 {offsets = [10, 0], sizes = [1, 128], strides = [1, 1]} : vector<16x128xf32> to vector<1x128xf32>
    %c24 = arith.constant 24 : index
    %c0_42 = arith.constant 0 : index
    %64 = vector.load %arg8[%c24, %c0_42] : memref<36x192xf32, #tpu.memory_space<vmem>>, vector<1x128xf32>
    tpu.vector_store %arg8[%c24, %c0_42], %63 {strides = array<i32>} : memref<36x192xf32, #tpu.memory_space<vmem>>, vector<1x128xf32>,
    %65 = vector.extract_strided_slice %6 {offsets = [11, 0], sizes = [1, 128], strides = [1, 1]} : vector<16x128xf32> to vector<1x128xf32>
    %c25 = arith.constant 25 : index
    %c0_43 = arith.constant 0 : index
    %66 = vector.load %arg8[%c25, %c0_43] : memref<36x192xf32, #tpu.memory_space<vmem>>, vector<1x128xf32>
    tpu.vector_store %arg8[%c25, %c0_43], %65 {strides = array<i32>} : memref<36x192xf32, #tpu.memory_space<vmem>>, vector<1x128xf32>,
    %67 = vector.extract_strided_slice %12 {offsets = [11, 0], sizes = [1, 128], strides = [1, 1]} : vector<16x128xf32> to vector<1x128xf32>
    %c26 = arith.constant 26 : index
    %c0_44 = arith.constant 0 : index
    %68 = vector.load %arg8[%c26, %c0_44] : memref<36x192xf32, #tpu.memory_space<vmem>>, vector<1x128xf32>
    tpu.vector_store %arg8[%c26, %c0_44], %67 {strides = array<i32>} : memref<36x192xf32, #tpu.memory_space<vmem>>, vector<1x128xf32>,
    %69 = vector.extract_strided_slice %6 {offsets = [12, 0], sizes = [1, 128], strides = [1, 1]} : vector<16x128xf32> to vector<1x128xf32>
    %c27 = arith.constant 27 : index
    %c0_45 = arith.constant 0 : index
    %70 = vector.load %arg8[%c27, %c0_45] : memref<36x192xf32, #tpu.memory_space<vmem>>, vector<1x128xf32>
    tpu.vector_store %arg8[%c27, %c0_45], %69 {strides = array<i32>} : memref<36x192xf32, #tpu.memory_space<vmem>>, vector<1x128xf32>,
    %71 = vector.extract_strided_slice %12 {offsets = [12, 0], sizes = [1, 128], strides = [1, 1]} : vector<16x128xf32> to vector<1x128xf32>
    %c28 = arith.constant 28 : index
    %c0_46 = arith.constant 0 : index
    %72 = vector.load %arg8[%c28, %c0_46] : memref<36x192xf32, #tpu.memory_space<vmem>>, vector<1x128xf32>
    tpu.vector_store %arg8[%c28, %c0_46], %71 {strides = array<i32>} : memref<36x192xf32, #tpu.memory_space<vmem>>, vector<1x128xf32>,
    %73 = vector.extract_strided_slice %6 {offsets = [13, 0], sizes = [1, 128], strides = [1, 1]} : vector<16x128xf32> to vector<1x128xf32>
    %c29 = arith.constant 29 : index
    %c0_47 = arith.constant 0 : index
    %74 = vector.load %arg8[%c29, %c0_47] : memref<36x192xf32, #tpu.memory_space<vmem>>, vector<1x128xf32>
    tpu.vector_store %arg8[%c29, %c0_47], %73 {strides = array<i32>} : memref<36x192xf32, #tpu.memory_space<vmem>>, vector<1x128xf32>,
    %75 = vector.extract_strided_slice %12 {offsets = [13, 0], sizes = [1, 128], strides = [1, 1]} : vector<16x128xf32> to vector<1x128xf32>
    %c30 = arith.constant 30 : index
    %c0_48 = arith.constant 0 : index
    %76 = vector.load %arg8[%c30, %c0_48] : memref<36x192xf32, #tpu.memory_space<vmem>>, vector<1x128xf32>
    tpu.vector_store %arg8[%c30, %c0_48], %75 {strides = array<i32>} : memref<36x192xf32, #tpu.memory_space<vmem>>, vector<1x128xf32>,
    %77 = vector.extract_strided_slice %6 {offsets = [14, 0], sizes = [1, 128], strides = [1, 1]} : vector<16x128xf32> to vector<1x128xf32>
    %c31 = arith.constant 31 : index
    %c0_49 = arith.constant 0 : index
    %78 = vector.load %arg8[%c31, %c0_49] : memref<36x192xf32, #tpu.memory_space<vmem>>, vector<1x128xf32>
    tpu.vector_store %arg8[%c31, %c0_49], %77 {strides = array<i32>} : memref<36x192xf32, #tpu.memory_space<vmem>>, vector<1x128xf32>,
    %79 = vector.extract_strided_slice %12 {offsets = [14, 0], sizes = [1, 128], strides = [1, 1]} : vector<16x128xf32> to vector<1x128xf32>
    %c32 = arith.constant 32 : index
    %c0_50 = arith.constant 0 : index
    %80 = vector.load %arg8[%c32, %c0_50] : memref<36x192xf32, #tpu.memory_space<vmem>>, vector<1x128xf32>
    tpu.vector_store %arg8[%c32, %c0_50], %79 {strides = array<i32>} : memref<36x192xf32, #tpu.memory_space<vmem>>, vector<1x128xf32>,
    %81 = vector.extract_strided_slice %6 {offsets = [15, 0], sizes = [1, 128], strides = [1, 1]} : vector<16x128xf32> to vector<1x128xf32>
    %c33 = arith.constant 33 : index
    %c0_51 = arith.constant 0 : index
    %82 = vector.load %arg8[%c33, %c0_51] : memref<36x192xf32, #tpu.memory_space<vmem>>, vector<1x128xf32>
    tpu.vector_store %arg8[%c33, %c0_51], %81 {strides = array<i32>} : memref<36x192xf32, #tpu.memory_space<vmem>>, vector<1x128xf32>,
    %83 = vector.extract_strided_slice %12 {offsets = [15, 0], sizes = [1, 128], strides = [1, 1]} : vector<16x128xf32> to vector<1x128xf32>
    %c34 = arith.constant 34 : index
    %c0_52 = arith.constant 0 : index
    %84 = vector.load %arg8[%c34, %c0_52] : memref<36x192xf32, #tpu.memory_space<vmem>>, vector<1x128xf32>
    tpu.vector_store %arg8[%c34, %c0_52], %83 {strides = array<i32>} : memref<36x192xf32, #tpu.memory_space<vmem>>, vector<1x128xf32>,
    %c0_53 = arith.constant 0 : index
    %c0_54 = arith.constant 0 : index
    %85 = vector.load %arg2[%c0_53, %c0_54] : memref<32x64xf32, #tpu.memory_space<vmem>>, vector<16x64xf32>
    %c1_55 = arith.constant 1 : index
    %c128 = arith.constant 128 : index
    %86 = vector.load %arg8[%c1_55, %c128] : memref<36x192xf32, #tpu.memory_space<vmem>>, vector<16x64xf32>
    tpu.vector_store %arg8[%c1_55, %c128], %85 {strides = array<i32>} : memref<36x192xf32, #tpu.memory_space<vmem>>, vector<16x64xf32>,
    %c16_56 = arith.constant 16 : index
    %c0_57 = arith.constant 0 : index
    %87 = vector.load %arg2[%c16_56, %c0_57] : memref<32x64xf32, #tpu.memory_space<vmem>>, vector<16x64xf32>
    %c19_58 = arith.constant 19 : index
    %c128_59 = arith.constant 128 : index
    %88 = vector.load %arg8[%c19_58, %c128_59] : memref<36x192xf32, #tpu.memory_space<vmem>>, vector<16x64xf32>
    tpu.vector_store %arg8[%c19_58, %c128_59], %87 {strides = array<i32>} : memref<36x192xf32, #tpu.memory_space<vmem>>, vector<16x64xf32>,
    %cst_60 = arith.constant 0.000000e+00 : f32
    %89 = vector.broadcast %cst_60 : f32 to vector<16x128xf32>
    %c0_61 = arith.constant 0 : index
    %c0_62 = arith.constant 0 : index
    %90 = vector.load %arg8[%c0_61, %c0_62] : memref<36x192xf32, #tpu.memory_space<vmem>>, vector<16x192xf32>
    %c0_63 = arith.constant 0 : index
    %c0_64 = arith.constant 0 : index
    %c0_65 = arith.constant 0 : index
    %91 = vector.load %arg4[%c0_63, %c0_64, %c0_65] : memref<3x192x128xf32, #tpu.memory_space<vmem>>, vector<1x192x128xf32>
    %92 = vector.shape_cast %91 : vector<1x192x128xf32> to vector<192x128xf32>
    %cst_66 = arith.constant dense<0.000000e+00> : vector<16x128xf32>
    %93 = tpu.matmul %90, %92, %cst_66 {dimension_numbers = #tpu.dot_dimension_numbers<[1], [0], [0], [1], [0, 0, 1, 1], [], []>} : vector<16x192xf32>, vector<192x128xf32>, vector<16x128xf32> -> vector<16x128xf32>
    %94 = arith.addf %89, %93 : vector<16x128xf32>
    %c1_67 = arith.constant 1 : index
    %c0_68 = arith.constant 0 : index
    %95 = vector.load %arg8[%c1_67, %c0_68] : memref<36x192xf32, #tpu.memory_space<vmem>>, vector<16x192xf32>
    %c1_69 = arith.constant 1 : index
    %c0_70 = arith.constant 0 : index
    %c0_71 = arith.constant 0 : index
    %96 = vector.load %arg4[%c1_69, %c0_70, %c0_71] : memref<3x192x128xf32, #tpu.memory_space<vmem>>, vector<1x192x128xf32>
    %97 = vector.shape_cast %96 : vector<1x192x128xf32> to vector<192x128xf32>
    %cst_72 = arith.constant dense<0.000000e+00> : vector<16x128xf32>
    %98 = tpu.matmul %95, %97, %cst_72 {dimension_numbers = #tpu.dot_dimension_numbers<[1], [0], [0], [1], [0, 0, 1, 1], [], []>} : vector<16x192xf32>, vector<192x128xf32>, vector<16x128xf32> -> vector<16x128xf32>
    %99 = arith.addf %94, %98 : vector<16x128xf32>
    %c2_73 = arith.constant 2 : index
    %c0_74 = arith.constant 0 : index
    %100 = vector.load %arg8[%c2_73, %c0_74] : memref<36x192xf32, #tpu.memory_space<vmem>>, vector<16x192xf32>
    %c2_75 = arith.constant 2 : index
    %c0_76 = arith.constant 0 : index
    %c0_77 = arith.constant 0 : index
    %101 = vector.load %arg4[%c2_75, %c0_76, %c0_77] : memref<3x192x128xf32, #tpu.memory_space<vmem>>, vector<1x192x128xf32>
    %102 = vector.shape_cast %101 : vector<1x192x128xf32> to vector<192x128xf32>
    %cst_78 = arith.constant dense<0.000000e+00> : vector<16x128xf32>
    %103 = tpu.matmul %100, %102, %cst_78 {dimension_numbers = #tpu.dot_dimension_numbers<[1], [0], [0], [1], [0, 0, 1, 1], [], []>} : vector<16x192xf32>, vector<192x128xf32>, vector<16x128xf32> -> vector<16x128xf32>
    %104 = arith.addf %99, %103 : vector<16x128xf32>
    %cst_79 = arith.constant 0.000000e+00 : f32
    %105 = vector.broadcast %cst_79 : f32 to vector<16x128xf32>
    %c18_80 = arith.constant 18 : index
    %c0_81 = arith.constant 0 : index
    %106 = vector.load %arg8[%c18_80, %c0_81] : memref<36x192xf32, #tpu.memory_space<vmem>>, vector<16x192xf32>
    %c0_82 = arith.constant 0 : index
    %c0_83 = arith.constant 0 : index
    %c0_84 = arith.constant 0 : index
    %107 = vector.load %arg4[%c0_82, %c0_83, %c0_84] : memref<3x192x128xf32, #tpu.memory_space<vmem>>, vector<1x192x128xf32>
    %108 = vector.shape_cast %107 : vector<1x192x128xf32> to vector<192x128xf32>
    %cst_85 = arith.constant dense<0.000000e+00> : vector<16x128xf32>
    %109 = tpu.matmul %106, %108, %cst_85 {dimension_numbers = #tpu.dot_dimension_numbers<[1], [0], [0], [1], [0, 0, 1, 1], [], []>} : vector<16x192xf32>, vector<192x128xf32>, vector<16x128xf32> -> vector<16x128xf32>
    %110 = arith.addf %105, %109 : vector<16x128xf32>
    %c19_86 = arith.constant 19 : index
    %c0_87 = arith.constant 0 : index
    %111 = vector.load %arg8[%c19_86, %c0_87] : memref<36x192xf32, #tpu.memory_space<vmem>>, vector<16x192xf32>
    %c1_88 = arith.constant 1 : index
    %c0_89 = arith.constant 0 : index
    %c0_90 = arith.constant 0 : index
    %112 = vector.load %arg4[%c1_88, %c0_89, %c0_90] : memref<3x192x128xf32, #tpu.memory_space<vmem>>, vector<1x192x128xf32>
    %113 = vector.shape_cast %112 : vector<1x192x128xf32> to vector<192x128xf32>
    %cst_91 = arith.constant dense<0.000000e+00> : vector<16x128xf32>
    %114 = tpu.matmul %111, %113, %cst_91 {dimension_numbers = #tpu.dot_dimension_numbers<[1], [0], [0], [1], [0, 0, 1, 1], [], []>} : vector<16x192xf32>, vector<192x128xf32>, vector<16x128xf32> -> vector<16x128xf32>
    %115 = arith.addf %110, %114 : vector<16x128xf32>
    %c20_92 = arith.constant 20 : index
    %c0_93 = arith.constant 0 : index
    %116 = vector.load %arg8[%c20_92, %c0_93] : memref<36x192xf32, #tpu.memory_space<vmem>>, vector<16x192xf32>
    %c2_94 = arith.constant 2 : index
    %c0_95 = arith.constant 0 : index
    %c0_96 = arith.constant 0 : index
    %117 = vector.load %arg4[%c2_94, %c0_95, %c0_96] : memref<3x192x128xf32, #tpu.memory_space<vmem>>, vector<1x192x128xf32>
    %118 = vector.shape_cast %117 : vector<1x192x128xf32> to vector<192x128xf32>
    %cst_97 = arith.constant dense<0.000000e+00> : vector<16x128xf32>
    %119 = tpu.matmul %116, %118, %cst_97 {dimension_numbers = #tpu.dot_dimension_numbers<[1], [0], [0], [1], [0, 0, 1, 1], [], []>} : vector<16x192xf32>, vector<192x128xf32>, vector<16x128xf32> -> vector<16x128xf32>
    %120 = arith.addf %115, %119 : vector<16x128xf32>
    %121 = tpu.iota {dimensions = array<i32: 0>} : vector<128x128xi32>
    %122 = tpu.iota {dimensions = array<i32: 1>} : vector<128x128xi32>
    %c8_i32 = arith.constant 8 : i32
    %c0_i32 = arith.constant 0 : i32
    %123 = arith.cmpi eq, %c8_i32, %c0_i32 : i32
    %c1_i32 = arith.constant 1 : i32
    %124 = arith.select %123, %c1_i32, %c8_i32 : i32
    %125 = vector.broadcast %124 : i32 to vector<128x128xi32>
    %126 = arith.remsi %121, %125 : vector<128x128xi32>
    %c0_i32_98 = arith.constant 0 : i32
    %127 = vector.broadcast %c0_i32_98 : i32 to vector<128x128xi32>
    %128 = arith.cmpi ne, %126, %127 : vector<128x128xi32>
    %c0_i32_99 = arith.constant 0 : i32
    %129 = vector.broadcast %c0_i32_99 : i32 to vector<128x128xi32>
    %130 = arith.cmpi slt, %126, %129 : vector<128x128xi32>
    %c0_i32_100 = arith.constant 0 : i32
    %131 = arith.cmpi slt, %124, %c0_i32_100 : i32
    %132 = vector.broadcast %131 : i1 to vector<128x128xi1>
    %133 = vector.broadcast %132 : vector<128x128xi1> to vector<128x128xi1>
    %134 = arith.xori %130, %133 : vector<128x128xi1>
    %135 = arith.andi %134, %128 : vector<128x128xi1>
    %136 = vector.broadcast %124 : i32 to vector<128x128xi32>
    %137 = arith.addi %126, %136 : vector<128x128xi32>
    %138 = arith.select %135, %137, %126 : vector<128x128xi1>, vector<128x128xi32>
    %c8_i32_101 = arith.constant 8 : i32
    %c0_i32_102 = arith.constant 0 : i32
    %139 = arith.cmpi eq, %c8_i32_101, %c0_i32_102 : i32
    %c1_i32_103 = arith.constant 1 : i32
    %140 = arith.select %139, %c1_i32_103, %c8_i32_101 : i32
    %141 = vector.broadcast %140 : i32 to vector<128x128xi32>
    %142 = arith.remsi %122, %141 : vector<128x128xi32>
    %c0_i32_104 = arith.constant 0 : i32
    %143 = vector.broadcast %c0_i32_104 : i32 to vector<128x128xi32>
    %144 = arith.cmpi ne, %142, %143 : vector<128x128xi32>
    %c0_i32_105 = arith.constant 0 : i32
    %145 = vector.broadcast %c0_i32_105 : i32 to vector<128x128xi32>
    %146 = arith.cmpi slt, %142, %145 : vector<128x128xi32>
    %c0_i32_106 = arith.constant 0 : i32
    %147 = arith.cmpi slt, %140, %c0_i32_106 : i32
    %148 = vector.broadcast %147 : i1 to vector<128x128xi1>
    %149 = vector.broadcast %148 : vector<128x128xi1> to vector<128x128xi1>
    %150 = arith.xori %146, %149 : vector<128x128xi1>
    %151 = arith.andi %150, %144 : vector<128x128xi1>
    %152 = vector.broadcast %140 : i32 to vector<128x128xi32>
    %153 = arith.addi %142, %152 : vector<128x128xi32>
    %154 = arith.select %151, %153, %142 : vector<128x128xi1>, vector<128x128xi32>
    %155 = arith.cmpi eq, %138, %154 : vector<128x128xi32>
    %156 = arith.extui %155 : vector<128x128xi1> to vector<128x128xi32>
    %157 = arith.sitofp %156 : vector<128x128xi32> to vector<128x128xf32>
    %cst_107 = arith.constant dense<0.000000e+00> : vector<128xf32>
    %158 = vector.multi_reduction <add>, %104, %cst_107 [0] : vector<16x128xf32> to vector<128xf32>
    %159 = vector.shape_cast %158 : vector<128xf32> to vector<1x128xf32>
    %cst_108 = arith.constant 0.000000e+00 : f32
    %160 = vector.broadcast %cst_108 : f32 to vector<1x128xf32>
    %161 = arith.addf %160, %159 : vector<1x128xf32>
    %cst_109 = arith.constant dense<0.000000e+00> : vector<128xf32>
    %162 = vector.multi_reduction <add>, %120, %cst_109 [0] : vector<16x128xf32> to vector<128xf32>
    %163 = vector.shape_cast %162 : vector<128xf32> to vector<1x128xf32>
    %164 = arith.addf %161, %163 : vector<1x128xf32>
    %165 = arith.mulf %104, %104 : vector<16x128xf32>
    %cst_110 = arith.constant dense<0.000000e+00> : vector<128xf32>
    %166 = vector.multi_reduction <add>, %165, %cst_110 [0] : vector<16x128xf32> to vector<128xf32>
    %167 = vector.shape_cast %166 : vector<128xf32> to vector<1x128xf32>
    %cst_111 = arith.constant 0.000000e+00 : f32
    %168 = vector.broadcast %cst_111 : f32 to vector<1x128xf32>
    %169 = arith.addf %168, %167 : vector<1x128xf32>
    %170 = arith.mulf %120, %120 : vector<16x128xf32>
    %cst_112 = arith.constant dense<0.000000e+00> : vector<128xf32>
    %171 = vector.multi_reduction <add>, %170, %cst_112 [0] : vector<16x128xf32> to vector<128xf32>
    %172 = vector.shape_cast %171 : vector<128xf32> to vector<1x128xf32>
    %173 = arith.addf %169, %172 : vector<1x128xf32>
    %cst_113 = arith.constant dense<0.000000e+00> : vector<1x128xf32>
    %174 = tpu.matmul %164, %157, %cst_113 {dimension_numbers = #tpu.dot_dimension_numbers<[1], [0], [0], [1], [0, 0, 1, 1], [], []>} : vector<1x128xf32>, vector<128x128xf32>, vector<1x128xf32> -> vector<1x128xf32>
    %cst_114 = arith.constant 0.001953125 : f32
    %175 = vector.broadcast %cst_114 : f32 to vector<1x128xf32>
    %176 = arith.mulf %174, %175 : vector<1x128xf32>
    %cst_115 = arith.constant dense<0.000000e+00> : vector<1x128xf32>
    %177 = tpu.matmul %173, %157, %cst_115 {dimension_numbers = #tpu.dot_dimension_numbers<[1], [0], [0], [1], [0, 0, 1, 1], [], []>} : vector<1x128xf32>, vector<128x128xf32>, vector<1x128xf32> -> vector<1x128xf32>
    %cst_116 = arith.constant 0.001953125 : f32
    %178 = vector.broadcast %cst_116 : f32 to vector<1x128xf32>
    %179 = arith.mulf %177, %178 : vector<1x128xf32>
    %180 = arith.mulf %176, %176 : vector<1x128xf32>
    %181 = arith.subf %179, %180 : vector<1x128xf32>
    %c1_117 = arith.constant 1 : index
    %c0_118 = arith.constant 0 : index
    %182 = vector.load %arg6[%c1_117, %c0_118] : memref<5x128xf32, #tpu.memory_space<vmem>>, vector<1x128xf32>
    %c2_119 = arith.constant 2 : index
    %c0_120 = arith.constant 0 : index
    %183 = vector.load %arg6[%c2_119, %c0_120] : memref<5x128xf32, #tpu.memory_space<vmem>>, vector<1x128xf32>
    %cst_121 = arith.constant 9.99999974E-6 : f32
    %184 = vector.broadcast %cst_121 : f32 to vector<1x128xf32>
    %185 = arith.addf %181, %184 : vector<1x128xf32>
    %186 = math.rsqrt %185 : vector<1x128xf32>
    %187 = arith.mulf %186, %182 : vector<1x128xf32>
    %188 = arith.mulf %176, %187 : vector<1x128xf32>
    %189 = arith.subf %183, %188 : vector<1x128xf32>
    %cst_122 = arith.constant 0.000000e+00 : f32
    %190 = vector.broadcast %cst_122 : f32 to vector<1x128xf32>
    %c0_123 = arith.constant 0 : index
    %c0_124 = arith.constant 0 : index
    %191 = vector.load %arg9[%c0_123, %c0_124] : memref<36x128xf32, #tpu.memory_space<vmem>>, vector<1x128xf32>
    tpu.vector_store %arg9[%c0_123, %c0_124], %190 {strides = array<i32>} : memref<36x128xf32, #tpu.memory_space<vmem>>, vector<1x128xf32>,
    %cst_125 = arith.constant 0.000000e+00 : f32
    %192 = vector.broadcast %cst_125 : f32 to vector<1x128xf32>
    %c17_126 = arith.constant 17 : index
    %c0_127 = arith.constant 0 : index
    %193 = vector.load %arg9[%c17_126, %c0_127] : memref<36x128xf32, #tpu.memory_space<vmem>>, vector<1x128xf32>
    tpu.vector_store %arg9[%c17_126, %c0_127], %192 {strides = array<i32>} : memref<36x128xf32, #tpu.memory_space<vmem>>, vector<1x128xf32>,
    %194 = vector.broadcast %187 : vector<1x128xf32> to vector<16x128xf32>
    %195 = arith.mulf %104, %194 : vector<16x128xf32>
    %196 = vector.broadcast %189 : vector<1x128xf32> to vector<16x128xf32>
    %197 = arith.addf %195, %196 : vector<16x128xf32>
    %cst_128 = arith.constant 0.000000e+00 : f32
    %198 = vector.broadcast %cst_128 : f32 to vector<16x128xf32>
    %199 = arith.maximumf %197, %198 : vector<16x128xf32>
    %c1_129 = arith.constant 1 : index
    %c0_130 = arith.constant 0 : index
    %200 = vector.load %arg9[%c1_129, %c0_130] : memref<36x128xf32, #tpu.memory_space<vmem>>, vector<16x128xf32>
    tpu.vector_store %arg9[%c1_129, %c0_130], %199 {strides = array<i32>} : memref<36x128xf32, #tpu.memory_space<vmem>>, vector<16x128xf32>,
    %cst_131 = arith.constant 0.000000e+00 : f32
    %201 = vector.broadcast %cst_131 : f32 to vector<1x128xf32>
    %c18_132 = arith.constant 18 : index
    %c0_133 = arith.constant 0 : index
    %202 = vector.load %arg9[%c18_132, %c0_133] : memref<36x128xf32, #tpu.memory_space<vmem>>, vector<1x128xf32>
    tpu.vector_store %arg9[%c18_132, %c0_133], %201 {strides = array<i32>} : memref<36x128xf32, #tpu.memory_space<vmem>>, vector<1x128xf32>,
    %cst_134 = arith.constant 0.000000e+00 : f32
    %203 = vector.broadcast %cst_134 : f32 to vector<1x128xf32>
    %c35_135 = arith.constant 35 : index
    %c0_136 = arith.constant 0 : index
    %204 = vector.load %arg9[%c35_135, %c0_136] : memref<36x128xf32, #tpu.memory_space<vmem>>, vector<1x128xf32>
    tpu.vector_store %arg9[%c35_135, %c0_136], %203 {strides = array<i32>} : memref<36x128xf32, #tpu.memory_space<vmem>>, vector<1x128xf32>,
    %205 = vector.broadcast %187 : vector<1x128xf32> to vector<16x128xf32>
    %206 = arith.mulf %120, %205 : vector<16x128xf32>
    %207 = vector.broadcast %189 : vector<1x128xf32> to vector<16x128xf32>
    %208 = arith.addf %206, %207 : vector<16x128xf32>
    %cst_137 = arith.constant 0.000000e+00 : f32
    %209 = vector.broadcast %cst_137 : f32 to vector<16x128xf32>
    %210 = arith.maximumf %208, %209 : vector<16x128xf32>
    %c19_138 = arith.constant 19 : index
    %c0_139 = arith.constant 0 : index
    %211 = vector.load %arg9[%c19_138, %c0_139] : memref<36x128xf32, #tpu.memory_space<vmem>>, vector<16x128xf32>
    tpu.vector_store %arg9[%c19_138, %c0_139], %210 {strides = array<i32>} : memref<36x128xf32, #tpu.memory_space<vmem>>, vector<16x128xf32>,
    %cst_140 = arith.constant 0.000000e+00 : f32
    %212 = vector.broadcast %cst_140 : f32 to vector<16x128xf32>
    %c0_141 = arith.constant 0 : index
    %c0_142 = arith.constant 0 : index
    %213 = vector.load %arg9[%c0_141, %c0_142] : memref<36x128xf32, #tpu.memory_space<vmem>>, vector<16x128xf32>
    %c0_143 = arith.constant 0 : index
    %c0_144 = arith.constant 0 : index
    %c0_145 = arith.constant 0 : index
    %214 = vector.load %arg5[%c0_143, %c0_144, %c0_145] : memref<3x128x128xf32, #tpu.memory_space<vmem>>, vector<1x128x128xf32>
    %215 = vector.shape_cast %214 : vector<1x128x128xf32> to vector<128x128xf32>
    %cst_146 = arith.constant dense<0.000000e+00> : vector<16x128xf32>
    %216 = tpu.matmul %213, %215, %cst_146 {dimension_numbers = #tpu.dot_dimension_numbers<[1], [0], [0], [1], [0, 0, 1, 1], [], []>} : vector<16x128xf32>, vector<128x128xf32>, vector<16x128xf32> -> vector<16x128xf32>
    %217 = arith.addf %212, %216 : vector<16x128xf32>
    %c1_147 = arith.constant 1 : index
    %c0_148 = arith.constant 0 : index
    %218 = vector.load %arg9[%c1_147, %c0_148] : memref<36x128xf32, #tpu.memory_space<vmem>>, vector<16x128xf32>
    %c1_149 = arith.constant 1 : index
    %c0_150 = arith.constant 0 : index
    %c0_151 = arith.constant 0 : index
    %219 = vector.load %arg5[%c1_149, %c0_150, %c0_151] : memref<3x128x128xf32, #tpu.memory_space<vmem>>, vector<1x128x128xf32>
    %220 = vector.shape_cast %219 : vector<1x128x128xf32> to vector<128x128xf32>
    %cst_152 = arith.constant dense<0.000000e+00> : vector<16x128xf32>
    %221 = tpu.matmul %218, %220, %cst_152 {dimension_numbers = #tpu.dot_dimension_numbers<[1], [0], [0], [1], [0, 0, 1, 1], [], []>} : vector<16x128xf32>, vector<128x128xf32>, vector<16x128xf32> -> vector<16x128xf32>
    %222 = arith.addf %217, %221 : vector<16x128xf32>
    %c2_153 = arith.constant 2 : index
    %c0_154 = arith.constant 0 : index
    %223 = vector.load %arg9[%c2_153, %c0_154] : memref<36x128xf32, #tpu.memory_space<vmem>>, vector<16x128xf32>
    %c2_155 = arith.constant 2 : index
    %c0_156 = arith.constant 0 : index
    %c0_157 = arith.constant 0 : index
    %224 = vector.load %arg5[%c2_155, %c0_156, %c0_157] : memref<3x128x128xf32, #tpu.memory_space<vmem>>, vector<1x128x128xf32>
    %225 = vector.shape_cast %224 : vector<1x128x128xf32> to vector<128x128xf32>
    %cst_158 = arith.constant dense<0.000000e+00> : vector<16x128xf32>
    %226 = tpu.matmul %223, %225, %cst_158 {dimension_numbers = #tpu.dot_dimension_numbers<[1], [0], [0], [1], [0, 0, 1, 1], [], []>} : vector<16x128xf32>, vector<128x128xf32>, vector<16x128xf32> -> vector<16x128xf32>
    %227 = arith.addf %222, %226 : vector<16x128xf32>
    %cst_159 = arith.constant 0.000000e+00 : f32
    %228 = vector.broadcast %cst_159 : f32 to vector<16x128xf32>
    %c18_160 = arith.constant 18 : index
    %c0_161 = arith.constant 0 : index
    %229 = vector.load %arg9[%c18_160, %c0_161] : memref<36x128xf32, #tpu.memory_space<vmem>>, vector<16x128xf32>
    %c0_162 = arith.constant 0 : index
    %c0_163 = arith.constant 0 : index
    %c0_164 = arith.constant 0 : index
    %230 = vector.load %arg5[%c0_162, %c0_163, %c0_164] : memref<3x128x128xf32, #tpu.memory_space<vmem>>, vector<1x128x128xf32>
    %231 = vector.shape_cast %230 : vector<1x128x128xf32> to vector<128x128xf32>
    %cst_165 = arith.constant dense<0.000000e+00> : vector<16x128xf32>
    %232 = tpu.matmul %229, %231, %cst_165 {dimension_numbers = #tpu.dot_dimension_numbers<[1], [0], [0], [1], [0, 0, 1, 1], [], []>} : vector<16x128xf32>, vector<128x128xf32>, vector<16x128xf32> -> vector<16x128xf32>
    %233 = arith.addf %228, %232 : vector<16x128xf32>
    %c19_166 = arith.constant 19 : index
    %c0_167 = arith.constant 0 : index
    %234 = vector.load %arg9[%c19_166, %c0_167] : memref<36x128xf32, #tpu.memory_space<vmem>>, vector<16x128xf32>
    %c1_168 = arith.constant 1 : index
    %c0_169 = arith.constant 0 : index
    %c0_170 = arith.constant 0 : index
    %235 = vector.load %arg5[%c1_168, %c0_169, %c0_170] : memref<3x128x128xf32, #tpu.memory_space<vmem>>, vector<1x128x128xf32>
    %236 = vector.shape_cast %235 : vector<1x128x128xf32> to vector<128x128xf32>
    %cst_171 = arith.constant dense<0.000000e+00> : vector<16x128xf32>
    %237 = tpu.matmul %234, %236, %cst_171 {dimension_numbers = #tpu.dot_dimension_numbers<[1], [0], [0], [1], [0, 0, 1, 1], [], []>} : vector<16x128xf32>, vector<128x128xf32>, vector<16x128xf32> -> vector<16x128xf32>
    %238 = arith.addf %233, %237 : vector<16x128xf32>
    %c20_172 = arith.constant 20 : index
    %c0_173 = arith.constant 0 : index
    %239 = vector.load %arg9[%c20_172, %c0_173] : memref<36x128xf32, #tpu.memory_space<vmem>>, vector<16x128xf32>
    %c2_174 = arith.constant 2 : index
    %c0_175 = arith.constant 0 : index
    %c0_176 = arith.constant 0 : index
    %240 = vector.load %arg5[%c2_174, %c0_175, %c0_176] : memref<3x128x128xf32, #tpu.memory_space<vmem>>, vector<1x128x128xf32>
    %241 = vector.shape_cast %240 : vector<1x128x128xf32> to vector<128x128xf32>
    %cst_177 = arith.constant dense<0.000000e+00> : vector<16x128xf32>
    %242 = tpu.matmul %239, %241, %cst_177 {dimension_numbers = #tpu.dot_dimension_numbers<[1], [0], [0], [1], [0, 0, 1, 1], [], []>} : vector<16x128xf32>, vector<128x128xf32>, vector<16x128xf32> -> vector<16x128xf32>
    %243 = arith.addf %238, %242 : vector<16x128xf32>
    %cst_178 = arith.constant dense<0.000000e+00> : vector<128xf32>
    %244 = vector.multi_reduction <add>, %227, %cst_178 [0] : vector<16x128xf32> to vector<128xf32>
    %245 = vector.shape_cast %244 : vector<128xf32> to vector<1x128xf32>
    %cst_179 = arith.constant 0.000000e+00 : f32
    %246 = vector.broadcast %cst_179 : f32 to vector<1x128xf32>
    %247 = arith.addf %246, %245 : vector<1x128xf32>
    %cst_180 = arith.constant dense<0.000000e+00> : vector<128xf32>
    %248 = vector.multi_reduction <add>, %243, %cst_180 [0] : vector<16x128xf32> to vector<128xf32>
    %249 = vector.shape_cast %248 : vector<128xf32> to vector<1x128xf32>
    %250 = arith.addf %247, %249 : vector<1x128xf32>
    %251 = arith.mulf %227, %227 : vector<16x128xf32>
    %cst_181 = arith.constant dense<0.000000e+00> : vector<128xf32>
    %252 = vector.multi_reduction <add>, %251, %cst_181 [0] : vector<16x128xf32> to vector<128xf32>
    %253 = vector.shape_cast %252 : vector<128xf32> to vector<1x128xf32>
    %cst_182 = arith.constant 0.000000e+00 : f32
    %254 = vector.broadcast %cst_182 : f32 to vector<1x128xf32>
    %255 = arith.addf %254, %253 : vector<1x128xf32>
    %256 = arith.mulf %243, %243 : vector<16x128xf32>
    %cst_183 = arith.constant dense<0.000000e+00> : vector<128xf32>
    %257 = vector.multi_reduction <add>, %256, %cst_183 [0] : vector<16x128xf32> to vector<128xf32>
    %258 = vector.shape_cast %257 : vector<128xf32> to vector<1x128xf32>
    %259 = arith.addf %255, %258 : vector<1x128xf32>
    %cst_184 = arith.constant dense<0.000000e+00> : vector<1x128xf32>
    %260 = tpu.matmul %250, %157, %cst_184 {dimension_numbers = #tpu.dot_dimension_numbers<[1], [0], [0], [1], [0, 0, 1, 1], [], []>} : vector<1x128xf32>, vector<128x128xf32>, vector<1x128xf32> -> vector<1x128xf32>
    %cst_185 = arith.constant 0.001953125 : f32
    %261 = vector.broadcast %cst_185 : f32 to vector<1x128xf32>
    %262 = arith.mulf %260, %261 : vector<1x128xf32>
    %cst_186 = arith.constant dense<0.000000e+00> : vector<1x128xf32>
    %263 = tpu.matmul %259, %157, %cst_186 {dimension_numbers = #tpu.dot_dimension_numbers<[1], [0], [0], [1], [0, 0, 1, 1], [], []>} : vector<1x128xf32>, vector<128x128xf32>, vector<1x128xf32> -> vector<1x128xf32>
    %cst_187 = arith.constant 0.001953125 : f32
    %264 = vector.broadcast %cst_187 : f32 to vector<1x128xf32>
    %265 = arith.mulf %263, %264 : vector<1x128xf32>
    %266 = arith.mulf %262, %262 : vector<1x128xf32>
    %267 = arith.subf %265, %266 : vector<1x128xf32>
    %c3_188 = arith.constant 3 : index
    %c0_189 = arith.constant 0 : index
    %268 = vector.load %arg6[%c3_188, %c0_189] : memref<5x128xf32, #tpu.memory_space<vmem>>, vector<1x128xf32>
    %c4_190 = arith.constant 4 : index
    %c0_191 = arith.constant 0 : index
    %269 = vector.load %arg6[%c4_190, %c0_191] : memref<5x128xf32, #tpu.memory_space<vmem>>, vector<1x128xf32>
    %cst_192 = arith.constant 9.99999974E-6 : f32
    %270 = vector.broadcast %cst_192 : f32 to vector<1x128xf32>
    %271 = arith.addf %267, %270 : vector<1x128xf32>
    %272 = math.rsqrt %271 : vector<1x128xf32>
    %273 = arith.mulf %272, %268 : vector<1x128xf32>
    %274 = arith.mulf %262, %273 : vector<1x128xf32>
    %275 = arith.subf %269, %274 : vector<1x128xf32>
    %276 = vector.broadcast %273 : vector<1x128xf32> to vector<16x128xf32>
    %277 = arith.mulf %227, %276 : vector<16x128xf32>
    %278 = vector.broadcast %275 : vector<1x128xf32> to vector<16x128xf32>
    %279 = arith.addf %277, %278 : vector<16x128xf32>
    %cst_193 = arith.constant 0.000000e+00 : f32
    %280 = vector.broadcast %cst_193 : f32 to vector<16x128xf32>
    %281 = arith.maximumf %279, %280 : vector<16x128xf32>
    %c0_194 = arith.constant 0 : index
    %c0_195 = arith.constant 0 : index
    %282 = vector.load %arg7[%c0_194, %c0_195] : memref<32x128xf32, #tpu.memory_space<vmem>>, vector<16x128xf32>
    tpu.vector_store %arg7[%c0_194, %c0_195], %281 {strides = array<i32>} : memref<32x128xf32, #tpu.memory_space<vmem>>, vector<16x128xf32>,
    %283 = vector.broadcast %273 : vector<1x128xf32> to vector<16x128xf32>
    %284 = arith.mulf %243, %283 : vector<16x128xf32>
    %285 = vector.broadcast %275 : vector<1x128xf32> to vector<16x128xf32>
    %286 = arith.addf %284, %285 : vector<16x128xf32>
    %cst_196 = arith.constant 0.000000e+00 : f32
    %287 = vector.broadcast %cst_196 : f32 to vector<16x128xf32>
    %288 = arith.maximumf %286, %287 : vector<16x128xf32>
    %c16_197 = arith.constant 16 : index
    %c0_198 = arith.constant 0 : index
    %289 = vector.load %arg7[%c16_197, %c0_198] : memref<32x128xf32, #tpu.memory_space<vmem>>, vector<16x128xf32>
    tpu.vector_store %arg7[%c16_197, %c0_198], %288 {strides = array<i32>} : memref<32x128xf32, #tpu.memory_space<vmem>>, vector<16x128xf32>,
    return
  }
  func.func @transform_0(%arg0: i32) -> (i32, i32) {
    %c0_i32 = arith.constant 0 : i32
    %c0_i32_0 = arith.constant 0 : i32
    %c0_i32_1 = arith.constant 0 : i32
    return %c0_i32, %c0_i32_0 : i32, i32
  }
  func.func @transform_1(%arg0: i32) -> (i32, i32) {
    %c0_i32 = arith.constant 0 : i32
    %c0_i32_0 = arith.constant 0 : i32
    %c0_i32_1 = arith.constant 0 : i32
    return %c0_i32, %c0_i32_0 : i32, i32
  }
  func.func @transform_2(%arg0: i32) -> (i32, i32, i32) {
    %c0_i32 = arith.constant 0 : i32
    %c0_i32_0 = arith.constant 0 : i32
    %c0_i32_1 = arith.constant 0 : i32
    %c0_i32_2 = arith.constant 0 : i32
    return %c0_i32, %c0_i32_0, %c0_i32_1 : i32, i32, i32
  }
  func.func @transform_3(%arg0: i32) -> (i32, i32, i32) {
    %c0_i32 = arith.constant 0 : i32
    %c0_i32_0 = arith.constant 0 : i32
    %c0_i32_1 = arith.constant 0 : i32
    %c0_i32_2 = arith.constant 0 : i32
    return %c0_i32, %c0_i32_0, %c0_i32_1 : i32, i32, i32
  }
  func.func @transform_4(%arg0: i32) -> (i32, i32, i32) {
    %c0_i32 = arith.constant 0 : i32
    %c0_i32_0 = arith.constant 0 : i32
    %c0_i32_1 = arith.constant 0 : i32
    %c0_i32_2 = arith.constant 0 : i32
    return %c0_i32, %c0_i32_0, %c0_i32_1 : i32, i32, i32
  }
  func.func @transform_5(%arg0: i32) -> (i32, i32) {
    %c0_i32 = arith.constant 0 : i32
    %c0_i32_0 = arith.constant 0 : i32
    %c0_i32_1 = arith.constant 0 : i32
    return %c0_i32, %c0_i32_0 : i32, i32
  }
  func.func @transform_6(%arg0: i32) -> (i32, i32) {
    %c0_i32 = arith.constant 0 : i32
    %c0_i32_0 = arith.constant 0 : i32
    %c0_i32_1 = arith.constant 0 : i32
    return %c0_i32, %c0_i32_0 : i32, i32
  }
}

</mosaic_0001>

<bundles_post_ra>
// kernel: mul.47
= control target key start
LH: loop header
LB: loop body
LE: loop exit
PB: predicated region body
PF: predicated region fallthrough
CT: control target
= control target key end

     0   :  { %s28_s0 = inlined_call_operand.vmem [shape: f32[8], index: 0, kind: input, shape index: {}]   ;;  %s29_s1 = inlined_call_operand.vmem [shape: f32[16,8], index: 1, kind: output, shape index: {}]  }
   0x1   :  { %v4_v0 = vld [vmem:[%s28_s0] ss:$0 sm:$0xff] }
   0x2   :  { %5 = vst [vmem:[%s29_s1] sm:$0xff] %v4_v0  ;;  %8 = vst [vmem:[%s29_s1 + $0x8] sm:$0xff] %v4_v0 }

// kernel: decoder_block_forward.1
= control target key start
LH: loop header
LB: loop body
LE: loop exit
PB: predicated region body
PF: predicated region fallthrough
CT: control target
= control target key end

     0   :  { %v4711_v3 = vmov 0.0   ;;  %vm38_vm0 = vcmask 523264   ;;  %v4708_v55 = vlaneseq  ;;  %vm315_vm2 = vcmask 1040384   ;;  %s4701_s2 = inlined_call_operand.vmem [shape: f32[2,64,128], index: 2, kind: input, shape index: {}]   ;;  %s4702_s0 = inlined_call_operand.vmem [shape: f32[16,64], index: 0, kind: input, shape index: {}]   ;;  %s4703_s3 = inlined_call_operand.vmem [shape: f32[3,192,128], index: 3, kind: input, shape index: {}]   ;;  %s4704_s1 = inlined_call_operand.vmem [shape: f32[32,64], index: 1, kind: input, shape index: {}]   ;;  %s4705_s5 = inlined_call_operand.vmem [shape: f32[5,128], index: 5, kind: input, shape index: {}]   ;;  %s4706_s4 = inlined_call_operand.vmem [shape: f32[3,128,128], index: 4, kind: input, shape index: {}]   ;;  %s4707_s6 = inlined_call_operand.vmem [shape: f32[32,128], index: 6, kind: output, shape index: {}]  }
   0x1   :  { %v33_v0 = vld [vmem:[%s4701_s2 + $0x38] sm:$0xff]  ;;  %v32_v2 = vld [vmem:[%s4701_s2 + $0x30] sm:$0xff]  ;;  %1468 = vst [vmem:[#allocation3] sm:$0x1] %v4711_v3  ;;  %1469 = vst [vmem:[#allocation3 + $0x11] sm:$0x1] %v4711_v3 }
   0x2   :  { %v2237_v1 = vld [vmem:[%s4701_s2 + $0x78] sm:$0xff]  ;;  %1486 = vst [vmem:[#allocation3 + $0x12] sm:$0x1] %v4711_v3  ;;  %1487 = vst [vmem:[#allocation3 + $0x23] sm:$0x1] %v4711_v3  ;;  %2608 = vmatprep.subr.mxu0 %v33_v0  ;;  %v2236_v4 = vld [vmem:[%s4701_s2 + $0x70] sm:$0xff] }
   0x3   :  { %2627 = vmatprep.subr.mxu1 %v2237_v1  ;;  %2609 = vmatpush3.msra.mxu0 %v33_v0  ;;  %v31_v5 = vld [vmem:[%s4701_s2 + $0x28] sm:$0xff]  ;;  %v30_v7 = vld [vmem:[%s4701_s2 + $0x20] sm:$0xff]  ;;  %v29_v9 = vld [vmem:[%s4701_s2 + $0x18] sm:$0xff]  ;;  %vm206_vm1 = vcmp.lt.s32.totalorder %v4708_v55, 192  ;;  %vm322_vm3 = vcmask 523265   ;;  %vm325_vm4 = vcmask 516096  }
   0x4   :  { %2628 = vmatpush3.msra.mxu1 %v2237_v1  ;;  %v2235_v6 = vld [vmem:[%s4701_s2 + $0x68] sm:$0xff]  ;;  %2610 = vmatprep.subr.mxu0 %v32_v2  ;;  %v2234_v8 = vld [vmem:[%s4701_s2 + $0x60] sm:$0xff]  ;;  %v2233_v10 = vld [vmem:[%s4701_s2 + $0x58] sm:$0xff]  ;;  %208 = vst.msk [vmem:[#allocation2] ss:$8 sm:$0x3] %vm206_vm1, %v4711_v3 }
   0x5   :  { %2629 = vmatprep.subr.mxu1 %v2236_v4  ;;  %2611 = vmatpush3.msra.mxu0 %v32_v2  ;;  %v28_v11 = vld [vmem:[%s4701_s2 + $0x10] sm:$0xff]  ;;  %v27_v13 = vld [vmem:[%s4701_s2 + $0x8] sm:$0xff]  ;;  %v26_v15 = vld [vmem:[%s4701_s2] sm:$0xff]  ;;  %211 = vst.msk [vmem:[#allocation2 + $0x21] ss:$8 sm:$0x3] %vm206_vm1, %v4711_v3 }
   0x6   :  { %2630 = vmatpush3.msra.mxu1 %v2236_v4  ;;  %2612 = vmatprep.subr.mxu0 %v31_v5  ;;  %v2232_v12 = vld [vmem:[%s4701_s2 + $0x50] sm:$0xff]  ;;  %v2231_v14 = vld [vmem:[%s4701_s2 + $0x48] sm:$0xff]  ;;  %v2230_v16 = vld [vmem:[%s4701_s2 + $0x40] sm:$0xff]  ;;  %214 = vst.msk [vmem:[#allocation2 + $0x22] ss:$8 sm:$0x3] %vm206_vm1, %v4711_v3 }
   0x7   :  { %2631 = vmatprep.subr.mxu1 %v2235_v6  ;;  %2613 = vmatpush3.msra.mxu0 %v31_v5  ;;  %v24_v17 = vld [vmem:[%s4702_s0] sm:$0xff]  ;;  %v25_v18 = vld [vmem:[%s4702_s0 + $0x8] sm:$0xff]  ;;  %v3104_v19 = vld [vmem:[%s4703_s3 + $0x78] sm:$0xff]  ;;  %217 = vst.msk [vmem:[#allocation2 + $0x43] ss:$8 sm:$0x3] %vm206_vm1, %v4711_v3 }
   0x8   :  { %2632 = vmatpush3.msra.mxu1 %v2235_v6  ;;  %2614 = vmatprep.subr.mxu0 %v30_v7  ;;  %v3109_v20 = vld [vmem:[%s4703_s3 + $0x138] sm:$0xff]  ;;  %v3118_v21 = vld [vmem:[%s4703_s3 + $0x70] sm:$0xff]  ;;  %v3132_v23 = vld [vmem:[%s4703_s3 + $0x68] sm:$0xff]  ;;  %vm406_vm5 = vcmask 1046528   ;;  %vm331_vm6 = vcmask 1042432   ;;  %vm338_vm7 = vcmask 523267  }
   0x9   :  { %2633 = vmatprep.subr.mxu1 %v2234_v8  ;;  %2615 = vmatpush3.msra.mxu0 %v30_v7  ;;  %v3123_v22 = vld [vmem:[%s4703_s3 + $0x130] sm:$0xff]  ;;  %v3137_v24 = vld [vmem:[%s4703_s3 + $0x128] sm:$0xff]  ;;  %v3146_v25 = vld [vmem:[%s4703_s3 + $0x60] sm:$0xff]  ;;  %vm341_vm8 = vcmask 518144   ;;  %vm721_vm9 = vcmask 1044480   ;;  %vm611_vm10 = vcmask 1045504  }
   0xa   :  { %2634 = vmatpush3.msra.mxu1 %v2234_v8  ;;  %2616 = vmatprep.subr.mxu0 %v29_v9  ;;  %v3151_v26 = vld [vmem:[%s4703_s3 + $0x120] sm:$0xff]  ;;  %v3160_v27 = vld [vmem:[%s4703_s3 + $0x58] sm:$0xff]  ;;  %v3174_v29 = vld [vmem:[%s4703_s3 + $0x50] sm:$0xff]  ;;  %vm916_vm11 = vcmask 1043456  }
   0xb   :  { %2635 = vmatprep.subr.mxu1 %v2233_v10  ;;  %2617 = vmatpush3.msra.mxu0 %v29_v9  ;;  %v3165_v28 = vld [vmem:[%s4703_s3 + $0x118] sm:$0xff]  ;;  %v3179_v30 = vld [vmem:[%s4703_s3 + $0x110] sm:$0xff]  ;;  %v3188_v31 = vld [vmem:[%s4703_s3 + $0x48] sm:$0xff] }
   0xc   :  { %2636 = vmatpush3.msra.mxu1 %v2233_v10  ;;  %2618 = vmatprep.subr.mxu0 %v28_v11  ;;  %v3193_v32 = vld [vmem:[%s4703_s3 + $0x108] sm:$0xff]  ;;  %v3202_v33 = vld [vmem:[%s4703_s3 + $0x40] sm:$0xff]  ;;  %v3216_v35 = vld [vmem:[%s4703_s3 + $0x38] sm:$0xff] }
   0xd   :  { %2637 = vmatprep.subr.mxu1 %v2232_v12  ;;  %2619 = vmatpush3.msra.mxu0 %v28_v11  ;;  %v3207_v34 = vld [vmem:[%s4703_s3 + $0x100] sm:$0xff]  ;;  %v3221_v36 = vld [vmem:[%s4703_s3 + $0xf8] sm:$0xff]  ;;  %v3230_v37 = vld [vmem:[%s4703_s3 + $0x30] sm:$0xff] }
   0xe   :  { %2638 = vmatpush3.msra.mxu1 %v2232_v12  ;;  %2620 = vmatprep.subr.mxu0 %v27_v13  ;;  %v3235_v38 = vld [vmem:[%s4703_s3 + $0xf0] sm:$0xff]  ;;  %v3244_v39 = vld [vmem:[%s4703_s3 + $0x28] sm:$0xff]  ;;  %v3258_v41 = vld [vmem:[%s4703_s3 + $0x20] sm:$0xff] }
   0xf   :  { %2639 = vmatprep.subr.mxu1 %v2231_v14  ;;  %2621 = vmatpush3.msra.mxu0 %v27_v13  ;;  %v3249_v40 = vld [vmem:[%s4703_s3 + $0xe8] sm:$0xff]  ;;  %v3263_v42 = vld [vmem:[%s4703_s3 + $0xe0] sm:$0xff]  ;;  %v3272_v43 = vld [vmem:[%s4703_s3 + $0x18] sm:$0xff] }
  0x10   :  { %2640 = vmatpush3.msra.mxu1 %v2231_v14  ;;  %2622 = vmatprep.subr.mxu0 %v26_v15  ;;  %v3277_v44 = vld [vmem:[%s4703_s3 + $0xd8] sm:$0xff]  ;;  %v3286_v45 = vld [vmem:[%s4703_s3 + $0x10] sm:$0xff]  ;;  %v3300_v47 = vld [vmem:[%s4703_s3 + $0x8] sm:$0xff] }
  0x11   :  { %2641 = vmatprep.subr.mxu1 %v2230_v16  ;;  %2623 = vmatpush3.msra.mxu0 %v26_v15  ;;  %v3291_v46 = vld [vmem:[%s4703_s3 + $0xd0] sm:$0xff]  ;;  %v3305_v48 = vld [vmem:[%s4703_s3 + $0xc8] sm:$0xff]  ;;  %v3314_v49 = vld [vmem:[%s4703_s3] sm:$0xff] }
  0x12   :  { %2624 = vmatprep.mubr.msk.f32.mxu0 %vm38_vm0, %v24_v17  ;;  %2642 = vmatpush3.msra.mxu1 %v2230_v16  ;;  %v3323_v50 = vld [vmem:[%s4703_s3 + $0xb8] sm:$0xff]  ;;  %v3332_v51 = vld [vmem:[%s4703_s3 + $0xc0] sm:$0xff]  ;;  %v3338_v52 = vld [vmem:[%s4703_s3 + $0xb0] sm:$0xff] }
  0x13   :  { %2643 = vmatprep.mubr.msk.f32.mxu1 %vm38_vm0, %v24_v17  ;;  %2625 = vmatmul.mubr.msk.f32.vlgmr.msra.gmra.mxu0 %vm38_vm0, %v25_v18  ;;  %v3346_v53 = vld [vmem:[%s4703_s3 + $0x178] sm:$0xff]  ;;  %v3352_v54 = vld [vmem:[%s4703_s3 + $0xa8] sm:$0xff]  ;;  %v311_v56 = vld [vmem:[%s4704_s1] sm:$0xff] }
  0x14   :  { %2644 = vmatmul.mubr.msk.f32.vlgmr.msra.gmra.mxu1 %vm38_vm0, %v25_v18  ;;  %503 = vmatprep.subr.mxu1 %v4711_v3  ;;  %4739 = vst [vmem:[#allocation4_spill] sm:$0xff] %v3352_v54  ;;  %v312_v57 = vld [vmem:[%s4704_s1 + $0x8] sm:$0xff]  ;;  %v3365_v58 = vld [vmem:[%s4703_s3 + $0x170] sm:$0xff]  ;;  %v316_v59 = vrot.slane %v311_v56, 7  ;;  %v3372_v61 = vld [vmem:[%s4703_s3 + $0xa0] sm:$0xff] }
  0x15   :  { %423 = vmatprep.subr.mxu0 %v4711_v3  ;;  %504 = vmatpush1.msra.mxu1 %v3104_v19  ;;  %v317_v60 = vrot.slane %v312_v57, 7  ;;  %4740 = vst [vmem:[#allocation5_spill] sm:$0xff] %v3372_v61  ;;  %v3380_v62 = vld [vmem:[%s4703_s3 + $0x168] sm:$0xff]  ;;  %v3391_v0 = vld [vmem:[%s4703_s3 + $0x98] sm:$0xff]  ;;  %v3399_v1 = vld [vmem:[%s4703_s3 + $0x160] sm:$0xff] }
  0x16   :  { %424 = vmatpush1.msra.mxu0 %v3109_v20  ;;  %505 = vmatprep.subr.mxu1 %v4711_v3  ;;  %4741 = vst [vmem:[#allocation6_spill] sm:$0xff] %v3391_v0  ;;  %323 = vst.msk [vmem:[#allocation2 + $0x8] sm:$0xfe] %vm322_vm3, %v316_v59  ;;  %v3404_v2 = vld [vmem:[%s4703_s3 + $0x90] sm:$0xff]  ;;  %v3409_v4 = vld [vmem:[%s4703_s3 + $0x158] sm:$0xff] }
  0x17   :  { %425 = vmatprep.subr.mxu0 %v4711_v3  ;;  %506 = vmatpush1.msra.mxu1 %v3118_v21  ;;  %v318_v63 = vsel %vm315_vm2, %v316_v59, %v317_v60  ;;  %4742 = vst [vmem:[#allocation7_spill] sm:$0xff] %v3404_v2  ;;  %v3416_v5 = vld [vmem:[%s4703_s3 + $0x88] sm:$0xff]  ;;  %v3423_v6 = vld [vmem:[%s4703_s3 + $0x150] sm:$0xff]  ;;  %v3430_v7 = vld [vmem:[%s4703_s3 + $0x80] sm:$0xff] }
  0x18   :  { %426 = vmatpush1.msra.mxu0 %v3123_v22  ;;  %507 = vmatprep.subr.mxu1 %v4711_v3  ;;  %324 = vst.msk [vmem:[#allocation2 + $0x18] sm:$0xff] %vm38_vm0, %v318_v63  ;;  %4743 = vst [vmem:[#allocation8_spill] sm:$0xff] %v3416_v5  ;;  %v3437_v8 = vld [vmem:[%s4703_s3 + $0x148] sm:$0xff]  ;;  %v3453_v14 = vld [vmem:[%s4703_s3 + $0x140] sm:$0xff] }
  0x19   :  { %427 = vmatprep.subr.mxu0 %v4711_v3  ;;  %508 = vmatpush1.msra.mxu1 %v3132_v23  ;;  %4744 = vst [vmem:[#allocation9_spill] sm:$0xff] %v3430_v7  ;;  %326 = vst.msk [vmem:[#allocation2 + $0x28] sm:$0x1] %vm325_vm4, %v317_v60  ;;  %v328_v16 = vld [vmem:[%s4704_s1 + $0x18] sm:$0xff]  ;;  %v327_v18 = vld [vmem:[%s4704_s1 + $0x10] sm:$0xff] }
  0x1a   :  { %428 = vmatpush1.msra.mxu0 %v3137_v24  ;;  %509 = vmatprep.subr.mxu1 %v4711_v3  ;;  %v333_v17 = vrot.slane %v328_v16, 5  ;;  %v332_v56 = vrot.slane %v327_v18, 5  ;;  %v2227_v59 = vld [vmem:[%s4705_s5] ss:$0 sm:$0xff] }
  0x1b   :  { %429 = vmatprep.subr.mxu0 %v4711_v3  ;;  %510 = vmatpush1.msra.mxu1 %v3146_v25 }
  0x1c   :  { %430 = vmatpush1.msra.mxu0 %v3151_v26  ;;  %511 = vmatprep.subr.mxu1 %v4711_v3  ;;  %v334_v57 = vsel %vm331_vm6, %v332_v56, %v333_v17  ;;  %339 = vst.msk [vmem:[#allocation2 + $0x28] sm:$0xf8] %vm338_vm7, %v332_v56 }
  0x1d   :  { %431 = vmatprep.subr.mxu0 %v4711_v3  ;;  %512 = vmatpush1.msra.mxu1 %v3160_v27  ;;  %v344_v9 = vld [vmem:[#allocation2 + $0x8] sm:$0xff]  ;;  %340 = vst.msk [vmem:[#allocation2 + $0x38] sm:$0xff] %vm38_vm0, %v334_v57 }
  0x1e   :  { %432 = vmatpush1.msra.mxu0 %v3165_v28  ;;  %513 = vmatprep.subr.mxu1 %v4711_v3  ;;  %v372_v11 = vld [vmem:[#allocation2 + $0x8] sm:$0xfe]  ;;  %342 = vst.msk [vmem:[#allocation2 + $0x48] sm:$0x7] %vm341_vm8, %v333_v17 }
  0x1f   :  { %433 = vmatprep.subr.mxu0 %v4711_v3  ;;  %514 = vmatpush1.msra.mxu1 %v3174_v29  ;;  %v3443_v10 = vld [vmem:[#allocation2 + $0x18] sm:$0xff]  ;;  %v410_v12 = vrot.slane %v372_v11, 1 }
  0x20   :  { %434 = vmatpush1.msra.mxu0 %v3179_v30  ;;  %515 = vmatprep.subr.mxu1 %v4711_v3  ;;  %v4710_v13 = vrot.slane %v3443_v10, 1 }
  0x21   :  { %435 = vmatprep.subr.mxu0 %v4711_v3  ;;  %516 = vmatpush1.msra.mxu1 %v3188_v31 }
  0x22   :  { %436 = vmatpush1.msra.mxu0 %v3193_v32  ;;  %517 = vmatprep.subr.mxu1 %v4711_v3  ;;  %v412_v15 = vsel %vm406_vm5, %v410_v12, %v4710_v13 }
  0x23   :  { %437 = vmatprep.subr.mxu0 %v4711_v3  ;;  %518 = vmatpush1.msra.mxu1 %v3202_v33 }
  0x24   :  { %438 = vmatpush1.msra.mxu0 %v3207_v34  ;;  %519 = vmatprep.subr.mxu1 %v4711_v3 }
  0x25   :  { %439 = vmatprep.subr.mxu0 %v4711_v3  ;;  %520 = vmatpush1.msra.mxu1 %v3216_v35 }
  0x26   :  { %440 = vmatpush1.msra.mxu0 %v3221_v36  ;;  %521 = vmatprep.subr.mxu1 %v4711_v3 }
  0x27   :  { %441 = vmatprep.subr.mxu0 %v4711_v3  ;;  %522 = vmatpush1.msra.mxu1 %v3230_v37 }
  0x28   :  { %442 = vmatpush1.msra.mxu0 %v3235_v38  ;;  %523 = vmatprep.subr.mxu1 %v4711_v3 }
  0x29   :  { %443 = vmatprep.subr.mxu0 %v4711_v3  ;;  %524 = vmatpush1.msra.mxu1 %v3244_v39 }
  0x2a   :  { %444 = vmatpush1.msra.mxu0 %v3249_v40  ;;  %525 = vmatprep.subr.mxu1 %v4711_v3 }
  0x2b   :  { %445 = vmatprep.subr.mxu0 %v4711_v3  ;;  %526 = vmatpush1.msra.mxu1 %v3258_v41 }
  0x2c   :  { %446 = vmatpush1.msra.mxu0 %v3263_v42  ;;  %527 = vmatprep.subr.mxu1 %v4711_v3 }
  0x2d   :  { %447 = vmatprep.subr.mxu0 %v4711_v3  ;;  %528 = vmatpush1.msra.mxu1 %v3272_v43 }
  0x2e   :  { %448 = vmatpush1.msra.mxu0 %v3277_v44  ;;  %529 = vmatprep.subr.mxu1 %v4711_v3 }
  0x2f   :  { %449 = vmatprep.subr.mxu0 %v4711_v3  ;;  %530 = vmatpush1.msra.mxu1 %v3286_v45 }
  0x30   :  { %450 = vmatpush1.msra.mxu0 %v3291_v46  ;;  %531 = vmatprep.subr.mxu1 %v4711_v3 }
  0x31   :  { %451 = vmatprep.subr.mxu0 %v4711_v3  ;;  %532 = vmatpush1.msra.mxu1 %v3300_v47 }
  0x32   :  { %452 = vmatpush1.msra.mxu0 %v3305_v48  ;;  %533 = vmatprep.subr.mxu1 %v4711_v3 }
  0x33   :  { %453 = vmatprep.subr.mxu0 %v4711_v3  ;;  %534 = vmatpush1.msra.mxu1 %v3314_v49 }
  0x34   :  { %551 = vmatprep.subr.mxu1 %v4711_v3  ;;  %454 = vmatpush1.msra.mxu0 %v3332_v51 }
  0x35   :  { %552 = vmatpush2.msra.mxu1 %v3323_v50  ;;  %471 = vmatprep.subr.mxu0 %v4711_v3 }
  0x36   :  { %553 = vmatprep.subr.mxu1 %v4711_v3  ;;  %472 = vmatpush2.msra.mxu0 %v3346_v53 }
  0x37   :  { %554 = vmatpush2.msra.mxu1 %v3338_v52  ;;  %473 = vmatprep.subr.mxu0 %v4711_v3 }
  0x38   :  { %555 = vmatprep.subr.mxu1 %v4711_v3  ;;  %474 = vmatpush2.msra.mxu0 %v3365_v58 }
  0x39   :  { %556 = vmatpush2.msra.mxu1 %v3352_v54  ;;  %475 = vmatprep.subr.mxu0 %v4711_v3 }
  0x3a   :  { %557 = vmatprep.subr.mxu1 %v4711_v3  ;;  %476 = vmatpush2.msra.mxu0 %v3380_v62 }
  0x3b   :  { %558 = vmatpush2.msra.mxu1 %v3372_v61  ;;  %477 = vmatprep.subr.mxu0 %v4711_v3 }
  0x3c   :  { %559 = vmatprep.subr.mxu1 %v4711_v3  ;;  %478 = vmatpush2.msra.mxu0 %v3399_v1 }
  0x3d   :  { %560 = vmatpush2.msra.mxu1 %v3391_v0  ;;  %479 = vmatprep.subr.mxu0 %v4711_v3 }
  0x3e   :  { %561 = vmatprep.subr.mxu1 %v4711_v3  ;;  %480 = vmatpush2.msra.mxu0 %v3409_v4 }
  0x3f   :  { %562 = vmatpush2.msra.mxu1 %v3404_v2  ;;  %481 = vmatprep.subr.mxu0 %v4711_v3 }
  0x40   :  { %563 = vmatprep.subr.mxu1 %v4711_v3  ;;  %482 = vmatpush2.msra.mxu0 %v3423_v6 }
  0x41   :  { %564 = vmatpush2.msra.mxu1 %v3416_v5  ;;  %483 = vmatprep.subr.mxu0 %v4711_v3 }
  0x42   :  { %565 = vmatprep.subr.mxu1 %v4711_v3  ;;  %484 = vmatpush2.msra.mxu0 %v3437_v8 }
  0x43   :  { %566 = vmatpush2.msra.mxu1 %v3430_v7  ;;  %2266 = vmatprep.mubr.msk.f32.mxu1 %vm38_vm0, %v344_v9 }
  0x44   :  { %738 = vmatprep.subr.mxu1 %v4711_v3  ;;  %485 = vmatprep.subr.mxu0 %v4711_v3 }
  0x45   :  { %486 = vmatpush2.msra.mxu0 %v3453_v14  ;;  %2264 = vmatprep.mubr.msk.f32.mxu0 %vm38_vm0, %v412_v15 }
  0x46   :  { %628 = vmatprep.subr.mxu0 %v4711_v3 }
  0xd3   :  { %v2626_v60 = vpop.f32.mrf.mxu0 }
  0xd4   :  { %v2645_v63 = vpop.f32.mrf.mxu1  ;;  %v117_v9 = vadd.f32 %v2626_v60, %v2227_v59 }
  0xd5   :  { %v201_v11 = vadd.f32 %v2645_v63, %v2227_v59  ;;  %v111_v55 = vpop.f32.mrf.mxu0 }
  0xd6   :  { %265 = vst [vmem:[#allocation2 + $0x23] sm:$0x1] %v117_v9  ;;  %v268_v12 = vrot.slane %v117_v9, 1  ;;  %v275_v15 = vrot.slane %v117_v9, 2  ;;  %v281_v16 = vrot.slane %v117_v9, 3  ;;  %v287_v18 = vrot.slane %v117_v9, 4  ;;  %v195_v56 = vpop.f32.mrf.mxu1 }
  0xd7   :  { %266 = vst [vmem:[#allocation2 + $0x24] sm:$0x1] %v201_v11  ;;  %v293_v13 = vrot.slane %v117_v9, 5  ;;  %v299_v57 = vrot.slane %v117_v9, 6  ;;  %v305_v3 = vrot.slane %v117_v9, 7  ;;  %v272_v17 = vrot.slane %v201_v11, 1 }
  0xd8   :  { %270 = vst [vmem:[#allocation2 + $0x25] sm:$0x1] %v268_v12  ;;  %277 = vst [vmem:[#allocation2 + $0x27] sm:$0x1] %v275_v15  ;;  %v278_v7 = vrot.slane %v201_v11, 2  ;;  %v284_v5 = vrot.slane %v201_v11, 3  ;;  %v112_v61 = vadd.f32 %v2227_v59, %v111_v55  ;;  %v196_v54 = vadd.f32 %v2227_v59, %v195_v56 }
  0xd9   :  { %283 = vst [vmem:[#allocation2 + $0x31] sm:$0x1] %v281_v16  ;;  %289 = vst [vmem:[#allocation2 + $0x33] sm:$0x1] %v287_v18  ;;  %v290_v60 = vrot.slane %v201_v11, 4  ;;  %v296_v63 = vrot.slane %v201_v11, 5 }
  0xda   :  { %295 = vst [vmem:[#allocation2 + $0x35] sm:$0x1] %v293_v13  ;;  %301 = vst [vmem:[#allocation2 + $0x37] sm:$0x1] %v299_v57  ;;  %v302_v2 = vrot.slane %v201_v11, 6  ;;  %v308_v0 = vrot.slane %v201_v11, 7 }
  0xdb   :  { %307 = vst [vmem:[#allocation2 + $0x41] sm:$0x1] %v305_v3  ;;  %274 = vst [vmem:[#allocation2 + $0x26] sm:$0x1] %v272_v17  ;;  %v222_v9 = vrot.slane %v112_v61, 1  ;;  %v229_v12 = vrot.slane %v112_v61, 2 }
  0xdc   :  { %280 = vst [vmem:[#allocation2 + $0x30] sm:$0x1] %v278_v7  ;;  %286 = vst [vmem:[#allocation2 + $0x32] sm:$0x1] %v284_v5  ;;  %v235_v15 = vrot.slane %v112_v61, 3  ;;  %v241_v16 = vrot.slane %v112_v61, 4 }
  0xdd   :  { %292 = vst [vmem:[#allocation2 + $0x34] sm:$0x1] %v290_v60  ;;  %298 = vst [vmem:[#allocation2 + $0x36] sm:$0x1] %v296_v63  ;;  %v247_v13 = vrot.slane %v112_v61, 5  ;;  %v253_v18 = vrot.slane %v112_v61, 6 }
  0xde   :  { %304 = vst [vmem:[#allocation2 + $0x40] sm:$0x1] %v302_v2  ;;  %310 = vst [vmem:[#allocation2 + $0x42] sm:$0x1] %v308_v0  ;;  %v259_v3 = vrot.slane %v112_v61, 7  ;;  %v226_v57 = vrot.slane %v196_v54, 1 }
  0xdf   :  { %219 = vst [vmem:[#allocation2 + $0x1] sm:$0x1] %v112_v61  ;;  %220 = vst [vmem:[#allocation2 + $0x2] sm:$0x1] %v196_v54  ;;  %v232_v55 = vrot.slane %v196_v54, 2  ;;  %v238_v5 = vrot.slane %v196_v54, 3 }
  0xe0   :  { %224 = vst [vmem:[#allocation2 + $0x3] sm:$0x1] %v222_v9  ;;  %231 = vst [vmem:[#allocation2 + $0x5] sm:$0x1] %v229_v12  ;;  %v244_v7 = vrot.slane %v196_v54, 4  ;;  %v250_v59 = vrot.slane %v196_v54, 5 }
  0xe1   :  { %237 = vst [vmem:[#allocation2 + $0x7] sm:$0x1] %v235_v15  ;;  %243 = vst [vmem:[#allocation2 + $0x11] sm:$0x1] %v241_v16  ;;  %v256_v0 = vrot.slane %v196_v54, 6  ;;  %v262_v2 = vrot.slane %v196_v54, 7 }
  0xe2   :  { %249 = vst [vmem:[#allocation2 + $0x13] sm:$0x1] %v247_v13  ;;  %255 = vst [vmem:[#allocation2 + $0x15] sm:$0x1] %v253_v18  ;;  %v374_v61 = vld [vmem:[#allocation2 + $0x28] sm:$0x1] }
  0xe3   :  { %261 = vst [vmem:[#allocation2 + $0x17] sm:$0x1] %v259_v3  ;;  %228 = vst [vmem:[#allocation2 + $0x4] sm:$0x1] %v226_v57  ;;  %v415_v54 = vrot.slane %v374_v61, 1  ;;  %v4745_v12 = vmov 0.0  }
  0xe4   :  { %234 = vst [vmem:[#allocation2 + $0x6] sm:$0x1] %v232_v55  ;;  %240 = vst [vmem:[#allocation2 + $0x10] sm:$0x1] %v238_v5  ;;  %v3481_v15 = vld [vmem:[%s4703_s3 + $0x1f8] sm:$0xff]  ;;  %v4746_v18 = vrot.slane %v3443_v10, 1 }
  0xe5   :  { %246 = vst [vmem:[#allocation2 + $0x12] sm:$0x1] %v244_v7  ;;  %252 = vst [vmem:[#allocation2 + $0x14] sm:$0x1] %v250_v59  ;;  %v3521_v55 = vld [vmem:[%s4703_s3 + $0x1d8] sm:$0xff] }
  0xe6   :  { %258 = vst [vmem:[#allocation2 + $0x16] sm:$0x1] %v256_v0  ;;  %264 = vst [vmem:[#allocation2 + $0x20] sm:$0x1] %v262_v2  ;;  %v416_v3 = vsel %vm406_vm5, %v4746_v18, %v415_v54  ;;  %v712_v5 = vld [vmem:[#allocation2 + $0x28] sm:$0xf8] }
  0xe7   :  { %v3665_v7 = vld [vmem:[%s4703_s3 + $0x218] sm:$0xff]  ;;  %v725_v59 = vrot.slane %v712_v5, 3  ;;  %v3670_v0 = vld [vmem:[#allocation2 + $0x30] sm:$0xff]  ;;  %v711_v2 = vld [vmem:[#allocation2 + $0x20] sm:$0xf8]  ;;  %v616_v54 = vrot.slane %v3443_v10, 2 }
  0xe8   :  { %v579_v61 = vld [vmem:[#allocation2 + $0x8] sm:$0xfc]  ;;  %v713_v18 = vld [vmem:[#allocation2 + $0x40] sm:$0x7] }
  0xe9   :  { %v3704_v5 = vld [vmem:[%s4703_s3 + $0x200] sm:$0xff] }
  0xeb   :  { %v343_v11 = vld [vmem:[#allocation2] sm:$0xff] }
  0xec   :  { %v371_v56 = vld [vmem:[#allocation2] sm:$0xfe]  ;;  %568 = vmatmul.mubr.f32.vlgmr.msra.gmra.mxu1 %v343_v11  ;;  %v3679_v11 = vld [vmem:[%s4703_s3 + $0x210] sm:$0xff] }
  0xed   :  { %v3471_v17 = vld [vmem:[#allocation2 + $0x10] sm:$0xff]  ;;  %v407_v60 = vrot.slane %v371_v56, 1  ;;  %739 = vmatpush1.msra.mxu1 %v3109_v20  ;;  %2267 = vmatprep.mubr.msk.f32.mxu1 %vm38_vm0, %v3443_v10  ;;  %v373_v9 = vld [vmem:[#allocation2 + $0x20] sm:$0x1]  ;;  %v722_v56 = vrot.slane %v711_v2, 3 }
  0xee   :  { %v408_v63 = vrot.slane %v3471_v17, 1  ;;  %740 = vmatprep.subr.mxu1 %v4745_v12  ;;  %v3489_v20 = vld [vmem:[%s4703_s3 + $0x1f0] sm:$0xff]  ;;  %v413_v13 = vrot.slane %v373_v9, 1  ;;  %v578_v9 = vld [vmem:[#allocation2] sm:$0xfc] }
  0xef   :  { %741 = vmatpush1.msra.mxu1 %v3123_v22  ;;  %v3503_v22 = vld [vmem:[%s4703_s3 + $0x1e8] sm:$0xff]  ;;  %v612_v10 = vrot.slane %v578_v9, 2 }
  0xf0   :  { %v409_v16 = vsel %vm406_vm5, %v407_v60, %v408_v63  ;;  %742 = vmatprep.subr.mxu1 %v4745_v12  ;;  %573 = vmatmul.mubr.f32.gmra.mxu1 %v3471_v17  ;;  %v414_v57 = vsel %vm406_vm5, %v408_v63, %v413_v13  ;;  %v723_v60 = vrot.slane %v3670_v0, 3  ;;  %v615_v63 = vrot.slane %v579_v61, 2  ;;  %v580_v61 = vld [vmem:[#allocation2 + $0x20] sm:$0x3] }
  0xf1   :  { %488 = vmatmul.mubr.f32.vlgmr.msra.gmra.mxu0 %v409_v16  ;;  %743 = vmatpush1.msra.mxu1 %v3137_v24  ;;  %v3512_v24 = vld [vmem:[%s4703_s3 + $0x1e0] sm:$0xff]  ;;  %v3691_v16 = vld [vmem:[%s4703_s3 + $0x208] sm:$0xff] }
  0xf2   :  { %629 = vmatpush1.msra.mxu0 %v3481_v15  ;;  %744 = vmatprep.subr.mxu1 %v4745_v12 }
  0xf3   :  { %630 = vmatprep.subr.mxu0 %v4745_v12  ;;  %2265 = vmatprep.mubr.msk.f32.mxu0 %vm38_vm0, %v416_v3  ;;  %v581_v3 = vld [vmem:[#allocation2 + $0x28] sm:$0x3] }
  0xf4   :  { %631 = vmatpush1.msra.mxu0 %v3489_v20  ;;  %745 = vmatpush1.msra.mxu1 %v3151_v26  ;;  %v3530_v26 = vld [vmem:[%s4703_s3 + $0x1d0] sm:$0xff]  ;;  %v620_v2 = vrot.slane %v581_v3, 2 }
  0xf5   :  { %632 = vmatprep.subr.mxu0 %v4745_v12  ;;  %493 = vmatmul.mubr.f32.gmra.mxu0 %v414_v57  ;;  %v724_v57 = vsel %vm721_vm9, %v722_v56, %v723_v60  ;;  %v618_v56 = vrot.slane %v580_v61, 2 }
  0xf6   :  { %633 = vmatpush1.msra.mxu0 %v3503_v22  ;;  %746 = vmatprep.subr.mxu1 %v4745_v12 }
  0xf7   :  { %634 = vmatprep.subr.mxu0 %v4745_v12  ;;  %747 = vmatpush1.msra.mxu1 %v3165_v28  ;;  %v3539_v28 = vld [vmem:[%s4703_s3 + $0x1c8] sm:$0xff] }
  0xf8   :  { %635 = vmatpush1.msra.mxu0 %v3512_v24  ;;  %748 = vmatprep.subr.mxu1 %v4745_v12 }
  0xf9   :  { %636 = vmatprep.subr.mxu0 %v4745_v12  ;;  %749 = vmatpush1.msra.mxu1 %v3179_v30  ;;  %v3548_v30 = vld [vmem:[%s4703_s3 + $0x1c0] sm:$0xff] }
  0xfa   :  { %637 = vmatpush1.msra.mxu0 %v3521_v55  ;;  %750 = vmatprep.subr.mxu1 %v4745_v12 }
  0xfb   :  { %638 = vmatprep.subr.mxu0 %v4745_v12  ;;  %751 = vmatpush1.msra.mxu1 %v3193_v32  ;;  %v3557_v32 = vld [vmem:[%s4703_s3 + $0x1b8] sm:$0xff] }
  0xfc   :  { %639 = vmatpush1.msra.mxu0 %v3530_v26  ;;  %752 = vmatprep.subr.mxu1 %v4745_v12 }
  0xfd   :  { %640 = vmatprep.subr.mxu0 %v4745_v12  ;;  %753 = vmatpush1.msra.mxu1 %v3207_v34  ;;  %v3566_v34 = vld [vmem:[%s4703_s3 + $0x1b0] sm:$0xff] }
  0xfe   :  { %641 = vmatpush1.msra.mxu0 %v3539_v28  ;;  %754 = vmatprep.subr.mxu1 %v4745_v12 }
  0xff   :  { %642 = vmatprep.subr.mxu0 %v4745_v12  ;;  %755 = vmatpush1.msra.mxu1 %v3221_v36  ;;  %v3575_v36 = vld [vmem:[%s4703_s3 + $0x1a8] sm:$0xff] }
 0x100   :  { %643 = vmatpush1.msra.mxu0 %v3548_v30  ;;  %756 = vmatprep.subr.mxu1 %v4745_v12 }
 0x101   :  { %644 = vmatprep.subr.mxu0 %v4745_v12  ;;  %757 = vmatpush1.msra.mxu1 %v3235_v38  ;;  %v3584_v38 = vld [vmem:[%s4703_s3 + $0x1a0] sm:$0xff] }
 0x102   :  { %645 = vmatpush1.msra.mxu0 %v3557_v32  ;;  %758 = vmatprep.subr.mxu1 %v4745_v12 }
 0x103   :  { %646 = vmatprep.subr.mxu0 %v4745_v12  ;;  %759 = vmatpush1.msra.mxu1 %v3249_v40  ;;  %v3593_v40 = vld [vmem:[%s4703_s3 + $0x198] sm:$0xff] }
 0x104   :  { %647 = vmatpush1.msra.mxu0 %v3566_v34  ;;  %760 = vmatprep.subr.mxu1 %v4745_v12 }
 0x105   :  { %648 = vmatprep.subr.mxu0 %v4745_v12  ;;  %761 = vmatpush1.msra.mxu1 %v3263_v42  ;;  %v3602_v42 = vld [vmem:[%s4703_s3 + $0x190] sm:$0xff] }
 0x106   :  { %649 = vmatpush1.msra.mxu0 %v3575_v36  ;;  %762 = vmatprep.subr.mxu1 %v4745_v12 }
 0x107   :  { %650 = vmatprep.subr.mxu0 %v4745_v12  ;;  %763 = vmatpush1.msra.mxu1 %v3277_v44  ;;  %v3611_v44 = vld [vmem:[%s4703_s3 + $0x188] sm:$0xff] }
 0x108   :  { %651 = vmatpush1.msra.mxu0 %v3584_v38  ;;  %764 = vmatprep.subr.mxu1 %v4745_v12 }
 0x109   :  { %652 = vmatprep.subr.mxu0 %v4745_v12  ;;  %765 = vmatpush1.msra.mxu1 %v3291_v46  ;;  %v3620_v46 = vld [vmem:[%s4703_s3 + $0x180] sm:$0xff] }
 0x10a   :  { %653 = vmatpush1.msra.mxu0 %v3593_v40  ;;  %766 = vmatprep.subr.mxu1 %v4745_v12 }
 0x10b   :  { %654 = vmatprep.subr.mxu0 %v4745_v12  ;;  %767 = vmatpush1.msra.mxu1 %v3305_v48  ;;  %v3629_v48 = vld [vmem:[%s4703_s3 + $0x238] sm:$0xff] }
 0x10c   :  { %655 = vmatpush1.msra.mxu0 %v3602_v42  ;;  %768 = vmatprep.subr.mxu1 %v4745_v12 }
 0x10d   :  { %656 = vmatprep.subr.mxu0 %v4745_v12  ;;  %769 = vmatpush1.msra.mxu1 %v3332_v51  ;;  %v3638_v51 = vld [vmem:[%s4703_s3 + $0x230] sm:$0xff] }
 0x10e   :  { %657 = vmatpush1.msra.mxu0 %v3611_v44  ;;  %786 = vmatprep.subr.mxu1 %v4745_v12 }
 0x10f   :  { %658 = vmatprep.subr.mxu0 %v4745_v12  ;;  %787 = vmatpush2.msra.mxu1 %v3346_v53  ;;  %v3647_v53 = vld [vmem:[%s4703_s3 + $0x228] sm:$0xff] }
 0x110   :  { %659 = vmatpush1.msra.mxu0 %v3620_v46  ;;  %788 = vmatprep.subr.mxu1 %v4745_v12 }
 0x111   :  { %676 = vmatprep.subr.mxu0 %v4745_v12  ;;  %789 = vmatpush2.msra.mxu1 %v3365_v58  ;;  %v3651_v58 = vld [vmem:[#allocation2 + $0x38] sm:$0xff] }
 0x112   :  { %677 = vmatpush2.msra.mxu0 %v3629_v48  ;;  %790 = vmatprep.subr.mxu1 %v4745_v12 }
 0x113   :  { %678 = vmatprep.subr.mxu0 %v4745_v12  ;;  %791 = vmatpush2.msra.mxu1 %v3380_v62  ;;  %v3658_v62 = vld [vmem:[%s4703_s3 + $0x220] sm:$0xff] }
 0x114   :  { %679 = vmatpush2.msra.mxu0 %v3638_v51  ;;  %792 = vmatprep.subr.mxu1 %v4745_v12 }
 0x115   :  { %680 = vmatprep.subr.mxu0 %v4745_v12  ;;  %793 = vmatpush2.msra.mxu1 %v3399_v1  ;;  %v726_v1 = vrot.slane %v3651_v58, 3 }
 0x116   :  { %681 = vmatpush2.msra.mxu0 %v3647_v53  ;;  %794 = vmatprep.subr.mxu1 %v4745_v12 }
 0x117   :  { %682 = vmatprep.subr.mxu0 %v4745_v12  ;;  %795 = vmatpush2.msra.mxu1 %v3409_v4  ;;  %v714_v4 = vld [vmem:[#allocation2 + $0x48] sm:$0x7] }
 0x118   :  { %683 = vmatpush2.msra.mxu0 %v3658_v62  ;;  %796 = vmatprep.subr.mxu1 %v4745_v12  ;;  %v730_v13 = vrot.slane %v714_v4, 3 }
 0x119   :  { %684 = vmatprep.subr.mxu0 %v4745_v12  ;;  %797 = vmatpush2.msra.mxu1 %v3423_v6  ;;  %v727_v6 = vsel %vm721_vm9, %v725_v59, %v726_v1  ;;  %v617_v59 = vsel %vm611_vm10, %v615_v63, %v616_v54 }
 0x11a   :  { %685 = vmatpush2.msra.mxu0 %v3665_v7  ;;  %798 = vmatprep.subr.mxu1 %v4745_v12 }
 0x11b   :  { %686 = vmatprep.subr.mxu0 %v4745_v12  ;;  %799 = vmatpush2.msra.mxu1 %v3437_v8  ;;  %v613_v8 = vrot.slane %v3471_v17, 2  ;;  %v728_v17 = vrot.slane %v713_v18, 3 }
 0x11c   :  { %687 = vmatpush2.msra.mxu0 %v3679_v11  ;;  %800 = vmatprep.subr.mxu1 %v4745_v12 }
 0x11d   :  { %688 = vmatprep.subr.mxu0 %v4745_v12  ;;  %801 = vmatpush2.msra.mxu1 %v3453_v14  ;;  %v731_v14 = vsel %vm721_vm9, %v726_v1, %v730_v13  ;;  %v614_v4 = vsel %vm611_vm10, %v612_v10, %v613_v8  ;;  %v621_v1 = vsel %vm611_vm10, %v616_v54, %v620_v2 }
 0x11e   :  { %2294 = vmatprep.mubr.msk.f32.mxu1 %vm38_vm0, %v727_v6  ;;  %689 = vmatpush2.msra.mxu0 %v3691_v16  ;;  %v619_v63 = vsel %vm611_vm10, %v613_v8, %v618_v56  ;;  %v4721_v6 = vmov 1.0  }
 0x11f   :  { %803 = vmatmul.mubr.f32.vlgmr.msra.gmra.mxu1 %v724_v57  ;;  %933 = vmatprep.subr.mxu1 %v4745_v12 }
 0x120   :  { %690 = vmatprep.subr.mxu0 %v4745_v12  ;;  %934 = vmatpush1.msra.mxu1 %v3481_v15  ;;  %v729_v15 = vsel %vm721_vm9, %v723_v60, %v728_v17 }
 0x121   :  { %691 = vmatpush2.msra.mxu0 %v3704_v5  ;;  %2292 = vmatprep.mubr.msk.f32.mxu0 %vm38_vm0, %v617_v59 }
 0x122   :  { %935 = vmatprep.subr.mxu1 %v4745_v12  ;;  %693 = vmatmul.mubr.f32.vlgmr.msra.gmra.mxu0 %v614_v4 }
 0x123   :  { %2295 = vmatprep.mubr.msk.f32.mxu1 %vm38_vm0, %v731_v14  ;;  %833 = vmatprep.subr.mxu0 %v4745_v12 }
 0x124   :  { %936 = vmatpush1.msra.mxu1 %v3489_v20  ;;  %834 = vmatpush1.msra.mxu0 %v3104_v19  ;;  %v909_v19 = vld [vmem:[#allocation2 + $0x28] sm:$0xf0] }
 0x125   :  { %808 = vmatmul.mubr.f32.gmra.mxu1 %v729_v15  ;;  %937 = vmatprep.subr.mxu1 %v4745_v12 }
 0x126   :  { %835 = vmatprep.subr.mxu0 %v4745_v12  ;;  %938 = vmatpush1.msra.mxu1 %v3503_v22  ;;  %v4750_v22 = vld [vmem:[#allocation7_spill] sm:$0xff] }
 0x127   :  { %2293 = vmatprep.mubr.msk.f32.mxu0 %vm38_vm0, %v621_v1  ;;  %836 = vmatpush1.msra.mxu0 %v3118_v21  ;;  %v4747_v21 = vld [vmem:[#allocation4_spill] sm:$0xff] }
 0x128   :  { %939 = vmatprep.subr.mxu1 %v4745_v12  ;;  %698 = vmatmul.mubr.f32.gmra.mxu0 %v619_v63 }
 0x129   :  { %837 = vmatprep.subr.mxu0 %v4745_v12  ;;  %940 = vmatpush1.msra.mxu1 %v3512_v24 }
 0x12a   :  { %838 = vmatpush1.msra.mxu0 %v3132_v23  ;;  %941 = vmatprep.subr.mxu1 %v4745_v12  ;;  %v706_v23 = vld [vmem:[#allocation2 + $0x28] sm:$0xfc] }
 0x12b   :  { %839 = vmatprep.subr.mxu0 %v4745_v12  ;;  %942 = vmatpush1.msra.mxu1 %v3521_v55  ;;  %v818_v55 = vrot.slane %v3670_v0, 2 }
 0x12c   :  { %840 = vmatpush1.msra.mxu0 %v3146_v25  ;;  %943 = vmatprep.subr.mxu1 %v4745_v12  ;;  %v920_v25 = vrot.slane %v909_v19, 4 }
 0x12d   :  { %841 = vmatprep.subr.mxu0 %v4745_v12  ;;  %944 = vmatpush1.msra.mxu1 %v3530_v26 }
 0x12e   :  { %842 = vmatpush1.msra.mxu0 %v3160_v27  ;;  %945 = vmatprep.subr.mxu1 %v4745_v12  ;;  %v921_v27 = vrot.slane %v3651_v58, 4 }
 0x12f   :  { %843 = vmatprep.subr.mxu0 %v4745_v12  ;;  %946 = vmatpush1.msra.mxu1 %v3539_v28  ;;  %v709_v28 = vld [vmem:[#allocation2 + $0x40] sm:$0x3] }
 0x130   :  { %844 = vmatpush1.msra.mxu0 %v3174_v29  ;;  %947 = vmatprep.subr.mxu1 %v4745_v12  ;;  %v908_v29 = vld [vmem:[#allocation2 + $0x20] sm:$0xf0] }
 0x131   :  { %845 = vmatprep.subr.mxu0 %v4745_v12  ;;  %948 = vmatpush1.msra.mxu1 %v3548_v30  ;;  %v4751_v30 = vld [vmem:[#allocation8_spill] sm:$0xff] }
 0x132   :  { %846 = vmatpush1.msra.mxu0 %v3188_v31  ;;  %949 = vmatprep.subr.mxu1 %v4745_v12  ;;  %v911_v31 = vld [vmem:[#allocation2 + $0x48] sm:$0xf] }
 0x133   :  { %847 = vmatprep.subr.mxu0 %v4745_v12  ;;  %950 = vmatpush1.msra.mxu1 %v3557_v32 }
 0x134   :  { %848 = vmatpush1.msra.mxu0 %v3202_v33  ;;  %951 = vmatprep.subr.mxu1 %v4745_v12  ;;  %v4748_v33 = vld [vmem:[#allocation5_spill] sm:$0xff] }
 0x135   :  { %849 = vmatprep.subr.mxu0 %v4745_v12  ;;  %952 = vmatpush1.msra.mxu1 %v3566_v34 }
 0x136   :  { %850 = vmatpush1.msra.mxu0 %v3216_v35  ;;  %953 = vmatprep.subr.mxu1 %v4745_v12  ;;  %v710_v35 = vld [vmem:[#allocation2 + $0x48] sm:$0x3] }
 0x137   :  { %851 = vmatprep.subr.mxu0 %v4745_v12  ;;  %954 = vmatpush1.msra.mxu1 %v3575_v36  ;;  %v825_v20 = vrot.slane %v710_v35, 2 }
 0x138   :  { %852 = vmatpush1.msra.mxu0 %v3230_v37  ;;  %955 = vmatprep.subr.mxu1 %v4745_v12  ;;  %v820_v37 = vrot.slane %v706_v23, 2 }
 0x139   :  { %853 = vmatprep.subr.mxu0 %v4745_v12  ;;  %956 = vmatpush1.msra.mxu1 %v3584_v38 }
 0x13a   :  { %854 = vmatpush1.msra.mxu0 %v3244_v39  ;;  %957 = vmatprep.subr.mxu1 %v4745_v12  ;;  %v821_v39 = vrot.slane %v3651_v58, 2 }
 0x13b   :  { %855 = vmatprep.subr.mxu0 %v4745_v12  ;;  %958 = vmatpush1.msra.mxu1 %v3593_v40  ;;  %v4752_v40 = vld [vmem:[#allocation9_spill] sm:$0xff] }
 0x13c   :  { %856 = vmatpush1.msra.mxu0 %v3258_v41  ;;  %959 = vmatprep.subr.mxu1 %v4745_v12  ;;  %v705_v41 = vld [vmem:[#allocation2 + $0x20] sm:$0xfc]  ;;  %v822_v26 = vsel %vm611_vm10, %v820_v37, %v821_v39  ;;  %v826_v38 = vsel %vm611_vm10, %v821_v39, %v825_v20  ;;  %v4776_v37 = vmov 0  ;;  %v4785_v20 = vmov 0 }
 0x13d   :  { %857 = vmatprep.subr.mxu0 %v4745_v12  ;;  %960 = vmatpush1.msra.mxu1 %v3602_v42  ;;  %v817_v24 = vrot.slane %v705_v41, 2 }
 0x13e   :  { %858 = vmatpush1.msra.mxu0 %v3272_v43  ;;  %961 = vmatprep.subr.mxu1 %v4745_v12  ;;  %v4749_v43 = vld [vmem:[#allocation6_spill] sm:$0xff] }
 0x13f   :  { %859 = vmatprep.subr.mxu0 %v4745_v12  ;;  %962 = vmatpush1.msra.mxu1 %v3611_v44  ;;  %v819_v42 = vsel %vm611_vm10, %v817_v24, %v818_v55  ;;  %v823_v44 = vrot.slane %v709_v28, 2  ;;  %v4791_v28 = vmov 0 }
 0x140   :  { %860 = vmatpush1.msra.mxu0 %v3286_v45  ;;  %963 = vmatprep.subr.mxu1 %v4745_v12  ;;  %v917_v45 = vrot.slane %v908_v29, 4 }
 0x141   :  { %861 = vmatprep.subr.mxu0 %v4745_v12  ;;  %964 = vmatpush1.msra.mxu1 %v3620_v46 }
 0x142   :  { %862 = vmatpush1.msra.mxu0 %v3300_v47  ;;  %981 = vmatprep.subr.mxu1 %v4745_v12  ;;  %v918_v47 = vrot.slane %v3670_v0, 4 }
 0x143   :  { %863 = vmatprep.subr.mxu0 %v4745_v12  ;;  %982 = vmatpush2.msra.mxu1 %v3629_v48  ;;  %v824_v48 = vsel %vm611_vm10, %v818_v55, %v823_v44  ;;  %v4788_v55 = vmov 0 }
 0x144   :  { %864 = vmatpush1.msra.mxu0 %v3314_v49  ;;  %983 = vmatprep.subr.mxu1 %v4745_v12  ;;  %v925_v49 = vrot.slane %v911_v31, 4  ;;  %v919_v32 = vsel %vm916_vm11, %v917_v45, %v918_v47  ;;  %v4773_v31 = vmov 0 }
 0x145   :  { %881 = vmatprep.subr.mxu0 %v4745_v12  ;;  %984 = vmatpush2.msra.mxu1 %v3638_v51  ;;  %v4753_v51 = vlaneseq }
 0x146   :  { %882 = vmatpush2.msra.mxu0 %v3323_v50  ;;  %985 = vmatprep.subr.mxu1 %v4745_v12  ;;  %v922_v50 = vsel %vm916_vm11, %v920_v25, %v921_v27  ;;  %v926_v34 = vsel %vm916_vm11, %v921_v27, %v925_v49  ;;  %v4770_v25 = vmov 0  ;;  %v4782_v49 = vmov 0 }
 0x147   :  { %883 = vmatprep.subr.mxu0 %v4745_v12  ;;  %986 = vmatpush2.msra.mxu1 %v3647_v53  ;;  %v3832_v53 = vshrl.u32 %v4753_v51, 7  ;;  %v1028_v58 = vand.u32 127, %v4753_v51 }
 0x148   :  { %884 = vmatpush2.msra.mxu0 %v3338_v52  ;;  %987 = vmatprep.subr.mxu1 %v4745_v12  ;;  %v910_v52 = vld [vmem:[#allocation2 + $0x40] sm:$0xf] }
 0x149   :  { %885 = vmatprep.subr.mxu0 %v4745_v12  ;;  %988 = vmatpush2.msra.mxu1 %v3658_v62  ;;  %v923_v36 = vrot.slane %v910_v52, 4  ;;  %v3835_v62 = vand.u32 7, %v1028_v58  ;;  %v1025_v0 = vadd.s32 112, %v3832_v53  ;;  %v1023_v10 = vadd.s32 96, %v3832_v53 }
 0x14a   :  { %886 = vmatpush2.msra.mxu0 %v4747_v21  ;;  %989 = vmatprep.subr.mxu1 %v4745_v12  ;;  %v1022_v3 = vadd.s32 88, %v3832_v53  ;;  %v1021_v59 = vadd.s32 80, %v3832_v53  ;;  %v1020_v2 = vadd.s32 72, %v3832_v53  ;;  %v1019_v56 = vadd.s32 64, %v3832_v53 }
 0x14b   :  { %887 = vmatprep.subr.mxu0 %v4745_v12  ;;  %990 = vmatpush2.msra.mxu1 %v3665_v7  ;;  %v924_v46 = vsel %vm916_vm11, %v918_v47, %v923_v36  ;;  %v1026_v7 = vadd.s32 120, %v3832_v53  ;;  %v1131_v60 = vand.u32 7, %v1025_v0  ;;  %v1117_v18 = vand.u32 7, %v1023_v10 }
 0x14c   :  { %888 = vmatpush2.msra.mxu0 %v4748_v33  ;;  %991 = vmatprep.subr.mxu1 %v4745_v12  ;;  %v1103_v17 = vand.u32 7, %v1021_v59  ;;  %v1096_v4 = vand.u32 7, %v1020_v2  ;;  %v1089_v1 = vand.u32 7, %v1019_v56  ;;  %v1018_v63 = vadd.s32 56, %v3832_v53 }
 0x14d   :  { %889 = vmatprep.subr.mxu0 %v4745_v12  ;;  %992 = vmatpush2.msra.mxu1 %v3679_v11  ;;  %v1138_v11 = vand.u32 7, %v1026_v7  ;;  %vm3845_vm13 = vcmp.eq.s32.totalorder %v1131_v60, %v3835_v62  ;;  %vm3881_vm15 = vcmp.eq.s32.totalorder %v1117_v18, %v3835_v62  ;;  %v1017_v23 = vadd.s32 48, %v3832_v53 }
 0x14e   :  { %890 = vmatpush2.msra.mxu0 %v4749_v43  ;;  %993 = vmatprep.subr.mxu1 %v4745_v12  ;;  %vm3909_vm1 = vcmp.eq.s32.totalorder %v1103_v17, %v3835_v62  ;;  %vm3923_vm2 = vcmp.eq.s32.totalorder %v1096_v4, %v3835_v62  ;;  %vm3937_vm3 = vcmp.eq.s32.totalorder %v1089_v1, %v3835_v62  ;;  %v1082_v21 = vand.u32 7, %v1018_v63 }
 0x14f   :  { %891 = vmatprep.subr.mxu0 %v4745_v12  ;;  %994 = vmatpush2.msra.mxu1 %v3691_v16  ;;  %vm3840_vm12 = vcmp.eq.s32.totalorder %v1138_v11, %v3835_v62  ;;  %v1024_v16 = vadd.s32 104, %v3832_v53  ;;  %v1075_v27 = vand.u32 7, %v1017_v23  ;;  %v1016_v29 = vadd.s32 40, %v3832_v53 }
 0x150   :  { %892 = vmatpush2.msra.mxu0 %v4750_v22  ;;  %995 = vmatprep.subr.mxu1 %v4745_v12  ;;  %vm3951_vm4 = vcmp.eq.s32.totalorder %v1082_v21, %v3835_v62  ;;  %v1015_v35 = vadd.s32 32, %v3832_v53  ;;  %v1014_v41 = vadd.s32 24, %v3832_v53  ;;  %v4779_v43 = vmov 0 }
 0x151   :  { %893 = vmatprep.subr.mxu0 %v4745_v12  ;;  %996 = vmatpush2.msra.mxu1 %v3704_v5  ;;  %v1124_v13 = vand.u32 7, %v1024_v16  ;;  %v1110_v5 = vand.u32 7, %v1022_v3  ;;  %v4771_v25 = vsel %vm3951_vm4, 4294967295, %v4770_v25  ;;  %vm3965_vm5 = vcmp.eq.s32.totalorder %v1075_v27, %v3835_v62 }
 0x152   :  { %2298 = vmatprep.mubr.msk.f32.mxu1 %vm38_vm0, %v922_v50  ;;  %894 = vmatpush2.msra.mxu0 %v4751_v30  ;;  %4772 = vst [vmem:[#allocation4_spill] sm:$0xff] %v4771_v25  ;;  %v4774_v31 = vsel %vm3965_vm5, 4294967295, %v4773_v31  ;;  %v1068_v33 = vand.u32 7, %v1016_v29  ;;  %v1061_v39 = vand.u32 7, %v1015_v35  ;;  %v1054_v45 = vand.u32 7, %v1014_v41 }
 0x153   :  { %998 = vmatmul.mubr.f32.vlgmr.msra.gmra.mxu1 %v919_v32  ;;  %895 = vmatprep.subr.mxu0 %v4745_v12  ;;  %vm3868_vm14 = vcmp.eq.s32.totalorder %v1124_v13, %v3835_v62  ;;  %4775 = vst [vmem:[#allocation5_spill] sm:$0xff] %v4774_v31  ;;  %v1013_v47 = vadd.s32 16, %v3832_v53  ;;  %v1012_v52 = vadd.s32 8, %v3832_v53  ;;  %v1033_v24 = vand.u32 7, %v3832_v53 }
 0x154   :  { %896 = vmatpush2.msra.mxu0 %v4752_v40  ;;  %2296 = vmatprep.mubr.msk.f32.mxu0 %vm38_vm0, %v822_v26  ;;  %vm3979_vm6 = vcmp.eq.s32.totalorder %v1068_v33, %v3835_v62  ;;  %vm3993_vm7 = vcmp.eq.s32.totalorder %v1061_v39, %v3835_v62  ;;  %vm4007_vm8 = vcmp.eq.s32.totalorder %v1054_v45, %v3835_v62 }
 0x155   :  { %898 = vmatmul.mubr.f32.vlgmr.msra.gmra.mxu0 %v819_v42  ;;  %2299 = vmatprep.mubr.msk.f32.mxu1 %vm38_vm0, %v926_v34  ;;  %v4777_v37 = vsel %vm3979_vm6, 4294967295, %v4776_v37  ;;  %v4780_v43 = vsel %vm3993_vm7, 4294967295, %v4779_v43  ;;  %v4783_v49 = vsel %vm4007_vm8, 4294967295, %v4782_v49  ;;  %v1047_v50 = vand.u32 7, %v1013_v47 }
 0x156   :  { %2297 = vmatprep.mubr.msk.f32.mxu0 %vm38_vm0, %v826_v38  ;;  %2646 = vmatprep.subr.mxu0 %v4745_v12  ;;  %vm3895_vm0 = vcmp.eq.s32.totalorder %v1110_v5, %v3835_v62  ;;  %4778 = vst [vmem:[#allocation6_spill] sm:$0xff] %v4777_v37  ;;  %4781 = vst [vmem:[#allocation7_spill] sm:$0xff] %v4780_v43  ;;  %v1040_v22 = vand.u32 7, %v1012_v52  ;;  %vm4044_vm11 = vcmp.eq.s32.totalorder %v1033_v24, %v3835_v62 }
 0x157   :  { %1003 = vmatmul.mubr.f32.gmra.mxu1 %v924_v46  ;;  %2681 = vmatprep.subr.mxu1 %v4745_v12  ;;  %4784 = vst [vmem:[#allocation8_spill] sm:$0xff] %v4783_v49  ;;  %vm4021_vm9 = vcmp.eq.s32.totalorder %v1047_v50, %v3835_v62  ;;  %v4792_v28 = vsel %vm4044_vm11, 4294967295, %v4791_v28 }
 0x158   :  { %2647 = vmatpush3.msk.msra.mxu0 %vm3840_vm12, %v4721_v6  ;;  %2682 = vmatpush3.msk.msra.mxu1 %vm3840_vm12, %v4721_v6  ;;  %v4786_v20 = vsel %vm4021_vm9, 4294967295, %v4785_v20  ;;  %vm4035_vm10 = vcmp.eq.s32.totalorder %v1040_v22, %v3835_v62  ;;  %4793 = vst [vmem:[#allocation11_spill] sm:$0xff] %v4792_v28  ;;  %v1461_v28 = vld [vmem:[%s4705_s5 + $0x1] sm:$0x1] }
 0x159   :  { %903 = vmatmul.mubr.f32.gmra.mxu0 %v824_v48  ;;  %2648 = vmatprep.subr.mxu0 %v4745_v12  ;;  %4787 = vst [vmem:[#allocation9_spill] sm:$0xff] %v4786_v20  ;;  %v4789_v55 = vsel %vm4035_vm10, 4294967295, %v4788_v55 }
 0x15a   :  { %2683 = vmatprep.subr.mxu1 %v4745_v12  ;;  %2649 = vmatpush3.msk.msra.mxu0 %vm3845_vm13, %v4721_v6  ;;  %4790 = vst [vmem:[#allocation10_spill] sm:$0xff] %v4789_v55  ;;  %v4318_v55 = vsub.s32 0, %v3832_v53 }
 0x15b   :  { %2684 = vmatpush3.msk.msra.mxu1 %vm3845_vm13, %v4721_v6  ;;  %2650 = vmatprep.subr.mxu0 %v4745_v12 }
 0x15c   :  { %2685 = vmatprep.subr.mxu1 %v4745_v12  ;;  %2651 = vmatpush3.msk.msra.mxu0 %vm3868_vm14, %v4721_v6 }
 0x15d   :  { %2686 = vmatpush3.msk.msra.mxu1 %vm3868_vm14, %v4721_v6  ;;  %2652 = vmatprep.subr.mxu0 %v4745_v12 }
 0x15e   :  { %2687 = vmatprep.subr.mxu1 %v4745_v12  ;;  %2653 = vmatpush3.msk.msra.mxu0 %vm3881_vm15, %v4721_v6 }
 0x15f   :  { %2688 = vmatpush3.msk.msra.mxu1 %vm3881_vm15, %v4721_v6  ;;  %2654 = vmatprep.subr.mxu0 %v4745_v12 }
 0x160   :  { %2689 = vmatprep.subr.mxu1 %v4745_v12  ;;  %2655 = vmatpush3.msk.msra.mxu0 %vm3895_vm0, %v4721_v6  ;;  %v4800_v61 = vld [vmem:[#allocation9_spill] sm:$0xff] }
 0x161   :  { %2690 = vmatpush3.msk.msra.mxu1 %vm3895_vm0, %v4721_v6  ;;  %2656 = vmatprep.subr.mxu0 %v4745_v12 }
 0x162   :  { %2691 = vmatprep.subr.mxu1 %v4745_v12  ;;  %2657 = vmatpush3.msk.msra.mxu0 %vm3909_vm1, %v4721_v6 }
 0x163   :  { %2692 = vmatpush3.msk.msra.mxu1 %vm3909_vm1, %v4721_v6  ;;  %2658 = vmatprep.subr.mxu0 %v4745_v12 }
 0x164   :  { %2693 = vmatprep.subr.mxu1 %v4745_v12  ;;  %2659 = vmatpush3.msk.msra.mxu0 %vm3923_vm2, %v4721_v6 }
 0x165   :  { %2694 = vmatpush3.msk.msra.mxu1 %vm3923_vm2, %v4721_v6  ;;  %2660 = vmatprep.subr.mxu0 %v4745_v12 }
 0x166   :  { %2695 = vmatprep.subr.mxu1 %v4745_v12  ;;  %2661 = vmatpush3.msk.msra.mxu0 %vm3937_vm3, %v4721_v6 }
 0x167   :  { %2696 = vmatpush3.msk.msra.mxu1 %vm3937_vm3, %v4721_v6  ;;  %2662 = vmatprep.subr.mxu0 %v4745_v12 }
 0x168   :  { %2697 = vmatprep.subr.mxu1 %v4745_v12  ;;  %2663 = vmatpush3.msk.msra.mxu0 %vm3951_vm4, %v4721_v6 }
 0x169   :  { %2698 = vmatpush3.msk.msra.mxu1 %vm3951_vm4, %v4721_v6  ;;  %2664 = vmatprep.subr.mxu0 %v4745_v12 }
 0x16a   :  { %2699 = vmatprep.subr.mxu1 %v4745_v12  ;;  %2665 = vmatpush3.msk.msra.mxu0 %vm3965_vm5, %v4721_v6 }
 0x16b   :  { %2700 = vmatpush3.msk.msra.mxu1 %vm3965_vm5, %v4721_v6  ;;  %2666 = vmatprep.subr.mxu0 %v4745_v12 }
 0x16c   :  { %2701 = vmatprep.subr.mxu1 %v4745_v12  ;;  %2667 = vmatpush3.msk.msra.mxu0 %vm3979_vm6, %v4721_v6 }
 0x16d   :  { %2702 = vmatpush3.msk.msra.mxu1 %vm3979_vm6, %v4721_v6  ;;  %2668 = vmatprep.subr.mxu0 %v4745_v12 }
 0x16e   :  { %2703 = vmatprep.subr.mxu1 %v4745_v12  ;;  %2669 = vmatpush3.msk.msra.mxu0 %vm3993_vm7, %v4721_v6 }
 0x16f   :  { %2704 = vmatpush3.msk.msra.mxu1 %vm3993_vm7, %v4721_v6  ;;  %2670 = vmatprep.subr.mxu0 %v4745_v12 }
 0x170   :  { %2705 = vmatprep.subr.mxu1 %v4745_v12  ;;  %2671 = vmatpush3.msk.msra.mxu0 %vm4007_vm8, %v4721_v6 }
 0x171   :  { %2706 = vmatpush3.msk.msra.mxu1 %vm4007_vm8, %v4721_v6  ;;  %2672 = vmatprep.subr.mxu0 %v4745_v12 }
 0x172   :  { %2707 = vmatprep.subr.mxu1 %v4745_v12  ;;  %2673 = vmatpush3.msk.msra.mxu0 %vm4021_vm9, %v4721_v6 }
 0x173   :  { %2708 = vmatpush3.msk.msra.mxu1 %vm4021_vm9, %v4721_v6  ;;  %2674 = vmatprep.subr.mxu0 %v4745_v12  ;;  %vm3005_vm9 = vmmov 0  }
 0x174   :  { %2709 = vmatprep.subr.mxu1 %v4745_v12  ;;  %2675 = vmatpush3.msk.msra.mxu0 %vm4035_vm10, %v4721_v6 }
 0x175   :  { %2678 = vmatprep.mubr.msk.f32.mxu0 %vm3005_vm9, %v4745_v12  ;;  %2676 = vmatprep.subr.mxu0 %v4745_v12 }
 0x176   :  { %2710 = vmatpush3.msk.msra.mxu1 %vm4035_vm10, %v4721_v6  ;;  %2677 = vmatpush3.msk.msra.mxu0 %vm4044_vm11, %v4721_v6 }
 0x177   :  { %2711 = vmatprep.subr.mxu1 %v4745_v12  ;;  %2713 = vmatprep.mubr.msk.f32.mxu1 %vm3005_vm9, %v4745_v12 }
 0x178   :  { %2712 = vmatpush3.msk.msra.mxu1 %vm4044_vm11, %v4721_v6 }
 0x1ac   :  { %v569_v26 = vpop.f32.mrf.mxu1 }
 0x1ae   :  { %v571_v30 = vpop.f32.mrf.mxu1 }
 0x1b0   :  { %v574_v36 = vpop.f32.mrf.mxu1 }
 0x1b1   :  { %v489_v32 = vpop.f32.mrf.mxu0 }
 0x1b2   :  { %v570_v34 = vadd.f32 %v569_v26, %v489_v32  ;;  %v576_v40 = vpop.f32.mrf.mxu1 }
 0x1b3   :  { %v491_v38 = vpop.f32.mrf.mxu0 }
 0x1b5   :  { %v494_v42 = vpop.f32.mrf.mxu0 }
 0x1b6   :  { %v575_v44 = vadd.f32 %v574_v36, %v494_v42 }
 0x1b7   :  { %v496_v46 = vpop.f32.mrf.mxu0 }
 0x1df   :  { %v804_v48 = vpop.f32.mrf.mxu1 }
 0x1e1   :  { %v806_v51 = vpop.f32.mrf.mxu1 }
 0x1e2   :  { %v694_v58 = vpop.f32.mrf.mxu0 }
 0x1e3   :  { %v4065_v13 = vadd.f32 %v694_v58, %v570_v34 }
 0x1e4   :  { %v696_v62 = vpop.f32.mrf.mxu0 }
 0x1e5   :  { %v809_v7 = vpop.f32.mrf.mxu1  ;;  %v1297_v18 = vmul.f32 %v4065_v13, %v4065_v13 }
 0x1e7   :  { %v811_v0 = vpop.f32.mrf.mxu1 }
 0x1e8   :  { %v699_v11 = vpop.f32.mrf.mxu0 }
 0x1e9   :  { %v4063_v16 = vadd.f32 %v699_v11, %v575_v44 }
 0x1ea   :  { %v701_v60 = vpop.f32.mrf.mxu0 }
 0x1eb   :  { %v1298_v10 = vmul.f32 %v4063_v16, %v4063_v16  ;;  %v1281_v3 = vadd.f32 %v4063_v16, %v4065_v13 }
 0x1ed   :  { %v1299_v59 = vadd.f32 %v1298_v10, %v1297_v18  ;;  %v1282_v4 = vrot.slane %v1281_v3, 4 }
 0x1ef   :  { %v1300_v21 = vrot.slane %v1299_v59, 4  ;;  %v1283_v29 = vadd.f32 %v1282_v4, %v1281_v3  ;;  %v4113_v4 = vld [vmem:[%s4706_s4 + $0x78] sm:$0xff] }
 0x1f0   :  { %2751 = vmatprep.subr.mxu1 %v4113_v4 }
 0x1f1   :  { %v1301_v41 = vadd.f32 %v1300_v21, %v1299_v59  ;;  %v1284_v47 = vrot.slane %v1283_v29, 2  ;;  %v4093_v59 = vld [vmem:[%s4706_s4 + $0xf0] sm:$0xff]  ;;  %v4141_v21 = vld [vmem:[%s4706_s4 + $0x68] sm:$0xff] }
 0x1f3   :  { %v1302_v24 = vrot.slane %v1301_v41, 2  ;;  %v1285_v32 = vadd.f32 %v1284_v47, %v1283_v29  ;;  %v4161_v29 = vld [vmem:[%s4706_s4 + $0xc0] sm:$0xff]  ;;  %v4189_v47 = vld [vmem:[%s4706_s4 + $0xb0] sm:$0xff] }
 0x1f5   :  { %v1303_v38 = vadd.f32 %v1302_v24, %v1301_v41  ;;  %v1286_v44 = vrot.slane %v1285_v32, 1  ;;  %v4183_v41 = vld [vmem:[%s4706_s4 + $0x50] sm:$0xff]  ;;  %v4217_v24 = vld [vmem:[%s4706_s4 + $0xa0] sm:$0xff] }
 0x1f7   :  { %v1304_v51 = vrot.slane %v1303_v38, 1 }
 0x1f9   :  { %v1305_v60 = vadd.f32 %v1304_v51, %v1303_v38  ;;  %v4259_v38 = vld [vmem:[%s4706_s4 + $0x88] sm:$0xff] }
 0x1fa   :  { %v4299_v51 = vld [vmem:[%s4706_s4 + $0x8] sm:$0xff] }
 0x213   :  { %v999_v5 = vpop.f32.mrf.mxu1 }
 0x215   :  { %v1001_v17 = vpop.f32.mrf.mxu1  ;;  %v899_v2 = vpop.f32.mrf.mxu0 }
 0x216   :  { %v900_v56 = vadd.f32 %v899_v2, %v804_v48  ;;  %v4100_v17 = vld [vmem:[%s4706_s4 + $0xe8] sm:$0xff]  ;;  %v4107_v2 = vld [vmem:[%s4706_s4 + $0xe0] sm:$0xff] }
 0x217   :  { %v1004_v1 = vpop.f32.mrf.mxu1  ;;  %v901_v63 = vpop.f32.mrf.mxu0 }
 0x218   :  { %v4073_v33 = vadd.f32 %v999_v5, %v900_v56  ;;  %v4086_v5 = vld [vmem:[%s4706_s4 + $0xf8] sm:$0xff]  ;;  %v4133_v63 = vld [vmem:[%s4706_s4 + $0xd0] sm:$0xff] }
 0x219   :  { %v1006_v23 = vpop.f32.mrf.mxu1  ;;  %v904_v27 = vpop.f32.mrf.mxu0  ;;  %2716 = vmatprep.subr.mxu0 %v4086_v5  ;;  %v4119_v56 = vld [vmem:[%s4706_s4 + $0xd8] sm:$0xff] }
 0x21a   :  { %v905_v35 = vadd.f32 %v904_v27, %v809_v7  ;;  %v1307_v50 = vmul.f32 %v4073_v33, %v4073_v33  ;;  %v1287_v7 = vadd.f32 %v1286_v44, %v1285_v32  ;;  %v4147_v23 = vld [vmem:[%s4706_s4 + $0xc8] sm:$0xff]  ;;  %v4155_v27 = vld [vmem:[%s4706_s4 + $0x60] sm:$0xff]  ;;  %v4239_v32 = vld [vmem:[%s4706_s4 + $0x30] sm:$0xff] }
 0x21b   :  { %v906_v39 = vpop.f32.mrf.mxu0  ;;  %v4281_v44 = vld [vmem:[%s4706_s4 + $0x18] sm:$0xff] }
 0x21c   :  { %v4075_v45 = vadd.f32 %v1004_v1, %v905_v35  ;;  %v4127_v1 = vld [vmem:[%s4706_s4 + $0x70] sm:$0xff]  ;;  %v4169_v35 = vld [vmem:[%s4706_s4 + $0x58] sm:$0xff] }
 0x21d   :  { %v4175_v39 = vld [vmem:[%s4706_s4 + $0xb8] sm:$0xff] }
 0x21e   :  { %v1289_v52 = vadd.f32 %v4075_v45, %v4073_v33  ;;  %v1308_v22 = vmul.f32 %v4075_v45, %v4075_v45 }
 0x220   :  { %v1290_v26 = vrot.slane %v1289_v52, 4  ;;  %v1309_v30 = vadd.f32 %v1308_v22, %v1307_v50  ;;  %v4197_v50 = vld [vmem:[%s4706_s4 + $0x48] sm:$0xff]  ;;  %v4211_v22 = vld [vmem:[%s4706_s4 + $0x40] sm:$0xff] }
 0x222   :  { %v1291_v34 = vadd.f32 %v1290_v26, %v1289_v52  ;;  %v1310_v36 = vrot.slane %v1309_v30, 4  ;;  %v4203_v52 = vld [vmem:[%s4706_s4 + $0xa8] sm:$0xff]  ;;  %v4225_v26 = vld [vmem:[%s4706_s4 + $0x38] sm:$0xff] }
 0x224   :  { %v1292_v40 = vrot.slane %v1291_v34, 2  ;;  %v1311_v42 = vadd.f32 %v1310_v36, %v1309_v30  ;;  %v4231_v30 = vld [vmem:[%s4706_s4 + $0x98] sm:$0xff]  ;;  %v4253_v36 = vld [vmem:[%s4706_s4 + $0x28] sm:$0xff] }
 0x226   :  { %v1293_v46 = vadd.f32 %v1292_v40, %v1291_v34  ;;  %v1312_v48 = vrot.slane %v1311_v42, 2  ;;  %v4245_v34 = vld [vmem:[%s4706_s4 + $0x90] sm:$0xff]  ;;  %v4267_v40 = vld [vmem:[%s4706_s4 + $0x20] sm:$0xff] }
 0x228   :  { %v1294_v58 = vrot.slane %v1293_v46, 1  ;;  %v1313_v62 = vadd.f32 %v1312_v48, %v1311_v42  ;;  %v4273_v42 = vld [vmem:[%s4706_s4 + $0x80] sm:$0xff]  ;;  %v4293_v48 = vld [vmem:[%s4706_s4 + $0x178] sm:$0xff] }
 0x22a   :  { %v1295_v0 = vadd.f32 %v1294_v58, %v1293_v46  ;;  %v1314_v11 = vrot.slane %v1313_v62, 1  ;;  %v4286_v46 = vld [vmem:[%s4706_s4 + $0x10] sm:$0xff]  ;;  %v4307_v58 = vld [vmem:[%s4706_s4] sm:$0xff] }
 0x22c   :  { %v1296_v10 = vadd.f32 %v1295_v0, %v1287_v7  ;;  %v1315_v18 = vadd.f32 %v1314_v11, %v1313_v62 }
 0x22e   :  { %2679 = vmatmul.mubr.f32.vlgmr.msra.gmra.mxu0 %v1296_v10  ;;  %v1316_v3 = vadd.f32 %v1315_v18, %v1305_v60 }
 0x22f   :  { %2717 = vmatpush3.msra.mxu0 %v4086_v5 }
 0x230   :  { %2714 = vmatmul.mubr.f32.vlgmr.msra.gmra.mxu1 %v1316_v3  ;;  %2718 = vmatprep.subr.mxu0 %v4093_v59 }
 0x231   :  { %2719 = vmatpush3.msra.mxu0 %v4093_v59  ;;  %2752 = vmatpush3.msra.mxu1 %v4113_v4 }
 0x232   :  { %2720 = vmatprep.subr.mxu0 %v4100_v17  ;;  %2753 = vmatprep.subr.mxu1 %v4127_v1 }
 0x233   :  { %2721 = vmatpush3.msra.mxu0 %v4100_v17  ;;  %2754 = vmatpush3.msra.mxu1 %v4127_v1 }
 0x234   :  { %2722 = vmatprep.subr.mxu0 %v4107_v2  ;;  %2755 = vmatprep.subr.mxu1 %v4141_v21 }
 0x235   :  { %2723 = vmatpush3.msra.mxu0 %v4107_v2  ;;  %2756 = vmatpush3.msra.mxu1 %v4141_v21 }
 0x236   :  { %2724 = vmatprep.subr.mxu0 %v4119_v56  ;;  %2757 = vmatprep.subr.mxu1 %v4155_v27 }
 0x237   :  { %2725 = vmatpush3.msra.mxu0 %v4119_v56  ;;  %2758 = vmatpush3.msra.mxu1 %v4155_v27 }
 0x238   :  { %2726 = vmatprep.subr.mxu0 %v4133_v63  ;;  %2759 = vmatprep.subr.mxu1 %v4169_v35 }
 0x239   :  { %2727 = vmatpush3.msra.mxu0 %v4133_v63  ;;  %2760 = vmatpush3.msra.mxu1 %v4169_v35 }
 0x23a   :  { %2728 = vmatprep.subr.mxu0 %v4147_v23  ;;  %2761 = vmatprep.subr.mxu1 %v4183_v41 }
 0x23b   :  { %2729 = vmatpush3.msra.mxu0 %v4147_v23  ;;  %2762 = vmatpush3.msra.mxu1 %v4183_v41 }
 0x23c   :  { %2730 = vmatprep.subr.mxu0 %v4161_v29  ;;  %2763 = vmatprep.subr.mxu1 %v4197_v50 }
 0x23d   :  { %2731 = vmatpush3.msra.mxu0 %v4161_v29  ;;  %2764 = vmatpush3.msra.mxu1 %v4197_v50 }
 0x23e   :  { %2732 = vmatprep.subr.mxu0 %v4175_v39  ;;  %2765 = vmatprep.subr.mxu1 %v4211_v22 }
 0x23f   :  { %2733 = vmatpush3.msra.mxu0 %v4175_v39  ;;  %2766 = vmatpush3.msra.mxu1 %v4211_v22 }
 0x240   :  { %2734 = vmatprep.subr.mxu0 %v4189_v47  ;;  %2767 = vmatprep.subr.mxu1 %v4225_v26 }
 0x241   :  { %2735 = vmatpush3.msra.mxu0 %v4189_v47  ;;  %2768 = vmatpush3.msra.mxu1 %v4225_v26 }
 0x242   :  { %2736 = vmatprep.subr.mxu0 %v4203_v52  ;;  %2769 = vmatprep.subr.mxu1 %v4239_v32 }
 0x243   :  { %2737 = vmatpush3.msra.mxu0 %v4203_v52  ;;  %2770 = vmatpush3.msra.mxu1 %v4239_v32 }
 0x244   :  { %2738 = vmatprep.subr.mxu0 %v4217_v24  ;;  %2771 = vmatprep.subr.mxu1 %v4253_v36 }
 0x245   :  { %2739 = vmatpush3.msra.mxu0 %v4217_v24  ;;  %2772 = vmatpush3.msra.mxu1 %v4253_v36 }
 0x246   :  { %2740 = vmatprep.subr.mxu0 %v4231_v30  ;;  %2773 = vmatprep.subr.mxu1 %v4267_v40 }
 0x247   :  { %2741 = vmatpush3.msra.mxu0 %v4231_v30  ;;  %2774 = vmatpush3.msra.mxu1 %v4267_v40 }
 0x248   :  { %2742 = vmatprep.subr.mxu0 %v4245_v34  ;;  %2775 = vmatprep.subr.mxu1 %v4281_v44 }
 0x249   :  { %2743 = vmatpush3.msra.mxu0 %v4245_v34  ;;  %2776 = vmatpush3.msra.mxu1 %v4281_v44 }
 0x24a   :  { %2744 = vmatprep.subr.mxu0 %v4259_v38  ;;  %2777 = vmatprep.subr.mxu1 %v4286_v46 }
 0x24b   :  { %2745 = vmatpush3.msra.mxu0 %v4259_v38  ;;  %2778 = vmatpush3.msra.mxu1 %v4286_v46 }
 0x24c   :  { %2746 = vmatprep.subr.mxu0 %v4273_v42  ;;  %2779 = vmatprep.subr.mxu1 %v4299_v51 }
 0x24d   :  { %2747 = vmatpush3.msra.mxu0 %v4273_v42  ;;  %2780 = vmatpush3.msra.mxu1 %v4299_v51 }
 0x24e   :  { %2786 = vmatprep.subr.mxu0 %v4293_v48  ;;  %2781 = vmatprep.subr.mxu1 %v4307_v58 }
 0x24f   :  { %2782 = vmatpush3.msra.mxu1 %v4307_v58 }
 0x250   :  { %2821 = vmatprep.subr.mxu1 %v4086_v5 }
 0x2ee   :  { %v1383_v62 = vpop.f32.mrf.mxu0 }
 0x2ef   :  { %v1387_v7 = vmul.f32 0.001953125, %v1383_v62  ;;  %v1462_v62 = vld [vmem:[%s4705_s5 + $0x2] sm:$0x1] }
 0x2f0   :  { %v2680_v0 = vpop.f32.mrf.mxu0  ;;  %v1454_v11 = vpop.f32.mrf.mxu1 }
 0x2f1   :  { %v1459_v60 = vmul.f32 %v1387_v7, %v1387_v7  ;;  %v1458_v10 = vmul.f32 0.001953125, %v1454_v11 }
 0x2f2   :  { %v2715_v18 = vpop.f32.mrf.mxu1 }
 0x2f3   :  { %v1460_v3 = vsub.f32 %v1458_v10, %v1459_v60 }
 0x2f5   :  { %v1463_v6 = vadd.f32 1e-05, %v1460_v3 }
 0x2f7   :  { %2999 = vrsqrt.f32 %v1463_v6 }
 0x304   :  { %v3000_v20 = vpop.eup %2999 }
 0x305   :  { %v1465_v49 = vmul.f32 %v3000_v20, %v1461_v28 }
 0x307   :  { %v1466_v0 = vmul.f32 %v1465_v49, %v1387_v7  ;;  %v1473_v11 = vrot.slane %v1465_v49, %v4318_v55 }
 0x309   :  { %v1467_v18 = vsub.f32 %v1462_v62, %v1466_v0  ;;  %v1474_v60 = vmul.f32 %v1473_v11, %v4065_v13  ;;  %v1475_v6 = vmul.f32 %v1473_v11, %v4063_v16  ;;  %v1488_v3 = vmul.f32 %v1473_v11, %v4073_v33  ;;  %v4337_v16 = vld [vmem:[%s4706_s4 + $0x170] sm:$0xff]  ;;  %v4358_v62 = vld [vmem:[%s4706_s4 + $0x158] sm:$0xff] }
 0x30a   :  { %v1489_v53 = vmul.f32 %v1473_v11, %v4075_v45  ;;  %v4365_v0 = vld [vmem:[%s4706_s4 + $0x150] sm:$0xff]  ;;  %v4374_v11 = vld [vmem:[%s4706_s4 + $0x148] sm:$0xff] }
 0x30b   :  { %v1479_v10 = vrot.slane %v1467_v18, %v4318_v55 }
 0x30d   :  { %v1480_v43 = vadd.f32 %v1479_v10, %v1474_v60  ;;  %v1481_v20 = vadd.f32 %v1479_v10, %v1475_v6  ;;  %v1490_v28 = vadd.f32 %v1488_v3, %v1479_v10  ;;  %v4329_v37 = vadd.f32 %v1489_v53, %v1479_v10 }
 0x30f   :  { %v1482_v31 = vmax.f32 %v1480_v43, 0.0  ;;  %v1483_v7 = vmax.f32 %v1481_v20, 0.0  ;;  %v1492_v25 = vmax.f32 %v1490_v28, 0.0  ;;  %v1493_v49 = vmax.f32 %v4329_v37, 0.0  ;;  %v4343_v43 = vld [vmem:[%s4706_s4 + $0x168] sm:$0xff] }
 0x311   :  { %1484 = vst [vmem:[#allocation3 + $0x1] sm:$0xff] %v1482_v31  ;;  %1485 = vst [vmem:[#allocation3 + $0x9] sm:$0xff] %v1483_v7  ;;  %2748 = vmatprep.mubr.f32.mxu0 %v1482_v31  ;;  %v4350_v31 = vld [vmem:[%s4706_s4 + $0x160] sm:$0xff] }
 0x312   :  { %1494 = vst [vmem:[#allocation3 + $0x13] sm:$0xff] %v1492_v25  ;;  %1495 = vst [vmem:[#allocation3 + $0x1b] sm:$0xff] %v1493_v49  ;;  %2749 = vmatmul.mubr.f32.vlgmr.msra.gmra.mxu0 %v1483_v7 }
 0x313   :  { %2787 = vmatpush3.msra.mxu0 %v4293_v48 }
 0x314   :  { %2788 = vmatprep.subr.mxu0 %v4337_v16 }
 0x315   :  { %2789 = vmatpush3.msra.mxu0 %v4337_v16 }
 0x316   :  { %2790 = vmatprep.subr.mxu0 %v4343_v43 }
 0x317   :  { %2791 = vmatpush3.msra.mxu0 %v4343_v43 }
 0x318   :  { %v1496_v13 = vld [vmem:[#allocation3] sm:$0xff]  ;;  %v1497_v33 = vld [vmem:[#allocation3 + $0x8] sm:$0xff]  ;;  %2792 = vmatprep.subr.mxu0 %v4350_v31 }
 0x319   :  { %v1683_v45 = vld [vmem:[#allocation3 + $0x2] sm:$0xff]  ;;  %2783 = vmatprep.mubr.f32.mxu1 %v1496_v13  ;;  %2793 = vmatpush3.msra.mxu0 %v4350_v31  ;;  %v1780_v37 = vld [vmem:[#allocation3 + $0x1a] sm:$0xff] }
 0x31a   :  { %2818 = vmatprep.mubr.f32.mxu0 %v1683_v45  ;;  %2784 = vmatmul.mubr.f32.vlgmr.msra.gmra.mxu1 %v1497_v33 }
 0x31b   :  { %2822 = vmatpush3.msra.mxu1 %v4086_v5  ;;  %2853 = vmatprep.mubr.f32.mxu1 %v1492_v25  ;;  %v4383_v25 = vld [vmem:[%s4706_s4 + $0x140] sm:$0xff]  ;;  %v4392_v5 = vld [vmem:[%s4706_s4 + $0x138] sm:$0xff] }
 0x31c   :  { %2823 = vmatprep.subr.mxu1 %v4093_v59  ;;  %2794 = vmatprep.subr.mxu0 %v4358_v62 }
 0x31d   :  { %2824 = vmatpush3.msra.mxu1 %v4093_v59  ;;  %2795 = vmatpush3.msra.mxu0 %v4358_v62  ;;  %v4401_v59 = vld [vmem:[%s4706_s4 + $0x130] sm:$0xff] }
 0x31e   :  { %2825 = vmatprep.subr.mxu1 %v4100_v17  ;;  %2796 = vmatprep.subr.mxu0 %v4365_v0 }
 0x31f   :  { %2826 = vmatpush3.msra.mxu1 %v4100_v17  ;;  %2797 = vmatpush3.msra.mxu0 %v4365_v0  ;;  %v4410_v17 = vld [vmem:[%s4706_s4 + $0x128] sm:$0xff] }
 0x320   :  { %2827 = vmatprep.subr.mxu1 %v4107_v2  ;;  %2798 = vmatprep.subr.mxu0 %v4374_v11 }
 0x321   :  { %2828 = vmatpush3.msra.mxu1 %v4107_v2  ;;  %2799 = vmatpush3.msra.mxu0 %v4374_v11  ;;  %v4419_v2 = vld [vmem:[%s4706_s4 + $0x120] sm:$0xff] }
 0x322   :  { %2829 = vmatprep.subr.mxu1 %v4119_v56  ;;  %2800 = vmatprep.subr.mxu0 %v4383_v25 }
 0x323   :  { %2830 = vmatpush3.msra.mxu1 %v4119_v56  ;;  %2801 = vmatpush3.msra.mxu0 %v4383_v25  ;;  %v4428_v56 = vld [vmem:[%s4706_s4 + $0x118] sm:$0xff] }
 0x324   :  { %2831 = vmatprep.subr.mxu1 %v4133_v63  ;;  %2802 = vmatprep.subr.mxu0 %v4392_v5 }
 0x325   :  { %2832 = vmatpush3.msra.mxu1 %v4133_v63  ;;  %2803 = vmatpush3.msra.mxu0 %v4392_v5  ;;  %v4437_v63 = vld [vmem:[%s4706_s4 + $0x110] sm:$0xff] }
 0x326   :  { %2833 = vmatprep.subr.mxu1 %v4147_v23  ;;  %2804 = vmatprep.subr.mxu0 %v4401_v59 }
 0x327   :  { %2834 = vmatpush3.msra.mxu1 %v4147_v23  ;;  %2805 = vmatpush3.msra.mxu0 %v4401_v59  ;;  %v4446_v23 = vld [vmem:[%s4706_s4 + $0x108] sm:$0xff] }
 0x328   :  { %2835 = vmatprep.subr.mxu1 %v4161_v29  ;;  %2806 = vmatprep.subr.mxu0 %v4410_v17 }
 0x329   :  { %2836 = vmatpush3.msra.mxu1 %v4161_v29  ;;  %2807 = vmatpush3.msra.mxu0 %v4410_v17  ;;  %v4455_v29 = vld [vmem:[%s4706_s4 + $0x100] sm:$0xff] }
 0x32a   :  { %2837 = vmatprep.subr.mxu1 %v4175_v39  ;;  %2808 = vmatprep.subr.mxu0 %v4419_v2 }
 0x32b   :  { %2838 = vmatpush3.msra.mxu1 %v4175_v39  ;;  %2809 = vmatpush3.msra.mxu0 %v4419_v2  ;;  %v1684_v39 = vld [vmem:[#allocation3 + $0xa] sm:$0xff] }
 0x32c   :  { %2839 = vmatprep.subr.mxu1 %v4189_v47  ;;  %2810 = vmatprep.subr.mxu0 %v4428_v56 }
 0x32d   :  { %2840 = vmatpush3.msra.mxu1 %v4189_v47  ;;  %2811 = vmatpush3.msra.mxu0 %v4428_v56  ;;  %v1779_v47 = vld [vmem:[#allocation3 + $0x12] sm:$0xff] }
 0x32e   :  { %2841 = vmatprep.subr.mxu1 %v4203_v52  ;;  %2812 = vmatprep.subr.mxu0 %v4437_v63 }
 0x32f   :  { %2842 = vmatpush3.msra.mxu1 %v4203_v52  ;;  %2813 = vmatpush3.msra.mxu0 %v4437_v63  ;;  %v1933_v52 = vld [vmem:[#allocation3 + $0x14] sm:$0xff] }
 0x330   :  { %2843 = vmatprep.subr.mxu1 %v4217_v24  ;;  %2814 = vmatprep.subr.mxu0 %v4446_v23 }
 0x331   :  { %2844 = vmatpush3.msra.mxu1 %v4217_v24  ;;  %2815 = vmatpush3.msra.mxu0 %v4446_v23 }
 0x332   :  { %2845 = vmatprep.subr.mxu1 %v4231_v30  ;;  %2816 = vmatprep.subr.mxu0 %v4455_v29 }
 0x333   :  { %2846 = vmatpush3.msra.mxu1 %v4231_v30  ;;  %2817 = vmatpush3.msra.mxu0 %v4455_v29 }
 0x334   :  { %2847 = vmatprep.subr.mxu1 %v4245_v34  ;;  %2819 = vmatmul.mubr.f32.vlgmr.msra.gmra.mxu0 %v1684_v39 }
 0x335   :  { %2848 = vmatpush3.msra.mxu1 %v4245_v34  ;;  %2856 = vmatprep.subr.mxu0 %v4113_v4 }
 0x336   :  { %2849 = vmatprep.subr.mxu1 %v4259_v38  ;;  %2857 = vmatpush3.msra.mxu0 %v4113_v4  ;;  %v1934_v4 = vld [vmem:[#allocation3 + $0x1c] sm:$0xff] }
 0x337   :  { %2850 = vmatpush3.msra.mxu1 %v4259_v38  ;;  %2888 = vmatprep.mubr.f32.mxu0 %v1779_v47 }
 0x338   :  { %2851 = vmatprep.subr.mxu1 %v4273_v42  ;;  %2858 = vmatprep.subr.mxu0 %v4127_v1 }
 0x339   :  { %2852 = vmatpush3.msra.mxu1 %v4273_v42  ;;  %2859 = vmatpush3.msra.mxu0 %v4127_v1  ;;  %v4794_v1 = vmov 1.0  }
 0x33a   :  { %2854 = vmatmul.mubr.f32.vlgmr.msra.gmra.mxu1 %v1493_v49  ;;  %2891 = vmatprep.subr.mxu1 %v4293_v48 }
 0x33b   :  { %2892 = vmatpush3.msra.mxu1 %v4293_v48  ;;  %2923 = vmatprep.mubr.f32.mxu1 %v1933_v52 }
 0x33c   :  { %2893 = vmatprep.subr.mxu1 %v4337_v16  ;;  %2860 = vmatprep.subr.mxu0 %v4141_v21 }
 0x33d   :  { %2894 = vmatpush3.msra.mxu1 %v4337_v16  ;;  %2861 = vmatpush3.msra.mxu0 %v4141_v21 }
 0x33e   :  { %2895 = vmatprep.subr.mxu1 %v4343_v43  ;;  %2862 = vmatprep.subr.mxu0 %v4155_v27 }
 0x33f   :  { %2896 = vmatpush3.msra.mxu1 %v4343_v43  ;;  %2863 = vmatpush3.msra.mxu0 %v4155_v27 }
 0x340   :  { %2897 = vmatprep.subr.mxu1 %v4350_v31  ;;  %2864 = vmatprep.subr.mxu0 %v4169_v35 }
 0x341   :  { %2898 = vmatpush3.msra.mxu1 %v4350_v31  ;;  %2865 = vmatpush3.msra.mxu0 %v4169_v35 }
 0x342   :  { %2899 = vmatprep.subr.mxu1 %v4358_v62  ;;  %2866 = vmatprep.subr.mxu0 %v4183_v41 }
 0x343   :  { %2900 = vmatpush3.msra.mxu1 %v4358_v62  ;;  %2867 = vmatpush3.msra.mxu0 %v4183_v41 }
 0x344   :  { %2901 = vmatprep.subr.mxu1 %v4365_v0  ;;  %2868 = vmatprep.subr.mxu0 %v4197_v50 }
 0x345   :  { %2902 = vmatpush3.msra.mxu1 %v4365_v0  ;;  %2869 = vmatpush3.msra.mxu0 %v4197_v50 }
 0x346   :  { %2903 = vmatprep.subr.mxu1 %v4374_v11  ;;  %2870 = vmatprep.subr.mxu0 %v4211_v22 }
 0x347   :  { %2904 = vmatpush3.msra.mxu1 %v4374_v11  ;;  %2871 = vmatpush3.msra.mxu0 %v4211_v22 }
 0x348   :  { %2905 = vmatprep.subr.mxu1 %v4383_v25  ;;  %2872 = vmatprep.subr.mxu0 %v4225_v26 }
 0x349   :  { %2906 = vmatpush3.msra.mxu1 %v4383_v25  ;;  %2873 = vmatpush3.msra.mxu0 %v4225_v26 }
 0x34a   :  { %2907 = vmatprep.subr.mxu1 %v4392_v5  ;;  %2874 = vmatprep.subr.mxu0 %v4239_v32 }
 0x34b   :  { %2908 = vmatpush3.msra.mxu1 %v4392_v5  ;;  %2875 = vmatpush3.msra.mxu0 %v4239_v32 }
 0x34c   :  { %2909 = vmatprep.subr.mxu1 %v4401_v59  ;;  %2876 = vmatprep.subr.mxu0 %v4253_v36 }
 0x34d   :  { %2910 = vmatpush3.msra.mxu1 %v4401_v59  ;;  %2877 = vmatpush3.msra.mxu0 %v4253_v36 }
 0x34e   :  { %2911 = vmatprep.subr.mxu1 %v4410_v17  ;;  %2878 = vmatprep.subr.mxu0 %v4267_v40 }
 0x34f   :  { %2912 = vmatpush3.msra.mxu1 %v4410_v17  ;;  %2879 = vmatpush3.msra.mxu0 %v4267_v40 }
 0x350   :  { %2913 = vmatprep.subr.mxu1 %v4419_v2  ;;  %2880 = vmatprep.subr.mxu0 %v4281_v44 }
 0x351   :  { %2914 = vmatpush3.msra.mxu1 %v4419_v2  ;;  %2881 = vmatpush3.msra.mxu0 %v4281_v44 }
 0x352   :  { %2915 = vmatprep.subr.mxu1 %v4428_v56  ;;  %2882 = vmatprep.subr.mxu0 %v4286_v46 }
 0x353   :  { %2916 = vmatpush3.msra.mxu1 %v4428_v56  ;;  %2883 = vmatpush3.msra.mxu0 %v4286_v46 }
 0x354   :  { %2917 = vmatprep.subr.mxu1 %v4437_v63  ;;  %2884 = vmatprep.subr.mxu0 %v4299_v51 }
 0x355   :  { %2918 = vmatpush3.msra.mxu1 %v4437_v63  ;;  %2885 = vmatpush3.msra.mxu0 %v4299_v51 }
 0x356   :  { %2919 = vmatprep.subr.mxu1 %v4446_v23  ;;  %2886 = vmatprep.subr.mxu0 %v4307_v58 }
 0x357   :  { %2920 = vmatpush3.msra.mxu1 %v4446_v23  ;;  %2887 = vmatpush3.msra.mxu0 %v4307_v58 }
 0x358   :  { %2921 = vmatprep.subr.mxu1 %v4455_v29  ;;  %2889 = vmatmul.mubr.f32.vlgmr.msra.gmra.mxu0 %v1780_v37 }
 0x359   :  { %2922 = vmatpush3.msra.mxu1 %v4455_v29  ;;  %2926 = vmatprep.subr.mxu0 %v4745_v12 }
 0x35a   :  { %2924 = vmatmul.mubr.f32.vlgmr.msra.gmra.mxu1 %v1934_v4  ;;  %2927 = vmatpush3.msk.msra.mxu0 %vm3840_vm12, %v4794_v1 }
 0x35b   :  { %2928 = vmatprep.subr.mxu0 %v4745_v12  ;;  %2961 = vmatprep.subr.mxu1 %v4745_v12 }
 0x35c   :  { %2929 = vmatpush3.msk.msra.mxu0 %vm3845_vm13, %v4794_v1  ;;  %2962 = vmatpush3.msk.msra.mxu1 %vm3840_vm12, %v4794_v1  ;;  %vm4801_vm12 = vnez %v4800_v61 }
 0x35d   :  { %2930 = vmatprep.subr.mxu0 %v4745_v12  ;;  %2963 = vmatprep.subr.mxu1 %v4745_v12 }
 0x35e   :  { %2931 = vmatpush3.msk.msra.mxu0 %vm3868_vm14, %v4794_v1  ;;  %2964 = vmatpush3.msk.msra.mxu1 %vm3845_vm13, %v4794_v1 }
 0x35f   :  { %2932 = vmatprep.subr.mxu0 %v4745_v12  ;;  %2965 = vmatprep.subr.mxu1 %v4745_v12 }
 0x360   :  { %2933 = vmatpush3.msk.msra.mxu0 %vm3881_vm15, %v4794_v1  ;;  %2966 = vmatpush3.msk.msra.mxu1 %vm3868_vm14, %v4794_v1 }
 0x361   :  { %2934 = vmatprep.subr.mxu0 %v4745_v12  ;;  %2967 = vmatprep.subr.mxu1 %v4745_v12 }
 0x362   :  { %2935 = vmatpush3.msk.msra.mxu0 %vm3895_vm0, %v4794_v1  ;;  %2968 = vmatpush3.msk.msra.mxu1 %vm3881_vm15, %v4794_v1 }
 0x363   :  { %2936 = vmatprep.subr.mxu0 %v4745_v12  ;;  %2969 = vmatprep.subr.mxu1 %v4745_v12 }
 0x364   :  { %2937 = vmatpush3.msk.msra.mxu0 %vm3909_vm1, %v4794_v1  ;;  %2970 = vmatpush3.msk.msra.mxu1 %vm3895_vm0, %v4794_v1 }
 0x365   :  { %2938 = vmatprep.subr.mxu0 %v4745_v12  ;;  %2971 = vmatprep.subr.mxu1 %v4745_v12 }
 0x366   :  { %2939 = vmatpush3.msk.msra.mxu0 %vm3923_vm2, %v4794_v1  ;;  %2972 = vmatpush3.msk.msra.mxu1 %vm3909_vm1, %v4794_v1 }
 0x367   :  { %2940 = vmatprep.subr.mxu0 %v4745_v12  ;;  %2973 = vmatprep.subr.mxu1 %v4745_v12 }
 0x368   :  { %2941 = vmatpush3.msk.msra.mxu0 %vm3937_vm3, %v4794_v1  ;;  %2974 = vmatpush3.msk.msra.mxu1 %vm3923_vm2, %v4794_v1 }
 0x369   :  { %2942 = vmatprep.subr.mxu0 %v4745_v12  ;;  %2975 = vmatprep.subr.mxu1 %v4745_v12 }
 0x36a   :  { %2943 = vmatpush3.msk.msra.mxu0 %vm3951_vm4, %v4794_v1  ;;  %2976 = vmatpush3.msk.msra.mxu1 %vm3937_vm3, %v4794_v1 }
 0x36b   :  { %2944 = vmatprep.subr.mxu0 %v4745_v12  ;;  %2977 = vmatprep.subr.mxu1 %v4745_v12 }
 0x36c   :  { %2945 = vmatpush3.msk.msra.mxu0 %vm3965_vm5, %v4794_v1  ;;  %2978 = vmatpush3.msk.msra.mxu1 %vm3951_vm4, %v4794_v1 }
 0x36d   :  { %2946 = vmatprep.subr.mxu0 %v4745_v12  ;;  %2979 = vmatprep.subr.mxu1 %v4745_v12 }
 0x36e   :  { %2947 = vmatpush3.msk.msra.mxu0 %vm3979_vm6, %v4794_v1  ;;  %2980 = vmatpush3.msk.msra.mxu1 %vm3965_vm5, %v4794_v1 }
 0x36f   :  { %2948 = vmatprep.subr.mxu0 %v4745_v12  ;;  %2981 = vmatprep.subr.mxu1 %v4745_v12 }
 0x370   :  { %2949 = vmatpush3.msk.msra.mxu0 %vm3993_vm7, %v4794_v1  ;;  %2982 = vmatpush3.msk.msra.mxu1 %vm3979_vm6, %v4794_v1 }
 0x371   :  { %2950 = vmatprep.subr.mxu0 %v4745_v12  ;;  %2983 = vmatprep.subr.mxu1 %v4745_v12 }
 0x372   :  { %2951 = vmatpush3.msk.msra.mxu0 %vm4007_vm8, %v4794_v1  ;;  %2984 = vmatpush3.msk.msra.mxu1 %vm3993_vm7, %v4794_v1 }
 0x373   :  { %2952 = vmatprep.subr.mxu0 %v4745_v12  ;;  %2985 = vmatprep.subr.mxu1 %v4745_v12 }
 0x374   :  { %2953 = vmatpush3.msk.msra.mxu0 %vm4801_vm12, %v4794_v1  ;;  %2986 = vmatpush3.msk.msra.mxu1 %vm4007_vm8, %v4794_v1 }
 0x375   :  { %2954 = vmatprep.subr.mxu0 %v4745_v12  ;;  %2987 = vmatprep.subr.mxu1 %v4745_v12 }
 0x376   :  { %2955 = vmatpush3.msk.msra.mxu0 %vm4035_vm10, %v4794_v1  ;;  %2988 = vmatpush3.msk.msra.mxu1 %vm4801_vm12, %v4794_v1 }
 0x377   :  { %2956 = vmatprep.subr.mxu0 %v4745_v12  ;;  %2989 = vmatprep.subr.mxu1 %v4745_v12 }
 0x378   :  { %2957 = vmatpush3.msk.msra.mxu0 %vm4044_vm11, %v4794_v1  ;;  %2958 = vmatprep.mubr.msk.f32.mxu0 %vm3005_vm9, %v4745_v12 }
 0x379   :  { %2990 = vmatpush3.msk.msra.mxu1 %vm4035_vm10, %v4794_v1  ;;  %2993 = vmatprep.mubr.msk.f32.mxu1 %vm3005_vm9, %v4745_v12 }
 0x37a   :  { %2991 = vmatprep.subr.mxu1 %v4745_v12 }
 0x37b   :  { %2992 = vmatpush3.msk.msra.mxu1 %vm4044_vm11, %v4794_v1 }
 0x3d2   :  { %v2750_v21 = vpop.f32.mrf.mxu0 }
 0x3d4   :  { %v1599_v35 = vpop.f32.mrf.mxu0 }
 0x3da   :  { %v2785_v27 = vpop.f32.mrf.mxu1 }
 0x3db   :  { %v1680_v26 = vadd.f32 %v2785_v27, %v2750_v21  ;;  %v2192_v21 = vld [vmem:[%s4705_s5 + $0x3] sm:$0x1] }
 0x3dc   :  { %v1674_v50 = vpop.f32.mrf.mxu1 }
 0x3dd   :  { %v1675_v24 = vadd.f32 %v1674_v50, %v1599_v35 }
 0x3f4   :  { %v2820_v41 = vpop.f32.mrf.mxu0 }
 0x3f5   :  { %v4671_v32 = vadd.f32 %v2820_v41, %v1680_v26  ;;  %v2193_v41 = vld [vmem:[%s4705_s5 + $0x4] sm:$0x1] }
 0x3f6   :  { %v1768_v22 = vpop.f32.mrf.mxu0 }
 0x3f7   :  { %v4669_v30 = vadd.f32 %v1768_v22, %v1675_v24  ;;  %v2029_v12 = vmul.f32 %v4671_v32, %v4671_v32 }
 0x3f9   :  { %v2028_v34 = vmul.f32 %v4669_v30, %v4669_v30  ;;  %v2012_v36 = vadd.f32 %v4671_v32, %v4669_v30 }
 0x3fa   :  { %v2855_v38 = vpop.f32.mrf.mxu1 }
 0x3fb   :  { %v2030_v40 = vadd.f32 %v2029_v12, %v2028_v34  ;;  %v2013_v42 = vrot.slane %v2012_v36, 4 }
 0x3fc   :  { %v1849_v44 = vpop.f32.mrf.mxu1 }
 0x3fd   :  { %v2031_v48 = vrot.slane %v2030_v40, 4  ;;  %v2014_v60 = vadd.f32 %v2013_v42, %v2012_v36 }
 0x3ff   :  { %v2032_v53 = vadd.f32 %v2031_v48, %v2030_v40  ;;  %v2015_v28 = vrot.slane %v2014_v60, 2 }
 0x401   :  { %v2033_v43 = vrot.slane %v2032_v53, 2  ;;  %v2016_v33 = vadd.f32 %v2015_v28, %v2014_v60 }
 0x403   :  { %v2034_v0 = vadd.f32 %v2033_v43, %v2032_v53  ;;  %v2017_v5 = vrot.slane %v2016_v33, 1 }
 0x405   :  { %v2035_v63 = vrot.slane %v2034_v0, 1  ;;  %v2018_v23 = vadd.f32 %v2017_v5, %v2016_v33 }
 0x407   :  { %v2036_v52 = vadd.f32 %v2035_v63, %v2034_v0 }
 0x418   :  { %v2890_v46 = vpop.f32.mrf.mxu0 }
 0x419   :  { %v1930_v51 = vadd.f32 %v2890_v46, %v2855_v38 }
 0x41a   :  { %v2925_v58 = vpop.f32.mrf.mxu1  ;;  %v1924_v18 = vpop.f32.mrf.mxu0 }
 0x41b   :  { %v2011_v6 = vadd.f32 %v2925_v58, %v1930_v51  ;;  %v1925_v10 = vadd.f32 %v1924_v18, %v1849_v44 }
 0x41c   :  { %v2001_v3 = vpop.f32.mrf.mxu1 }
 0x41d   :  { %v2010_v20 = vadd.f32 %v2001_v3, %v1925_v10  ;;  %v2039_v7 = vmul.f32 %v2011_v6, %v2011_v6 }
 0x41f   :  { %v2020_v49 = vadd.f32 %v2011_v6, %v2010_v20  ;;  %v2038_v16 = vmul.f32 %v2010_v20, %v2010_v20 }
 0x421   :  { %v2021_v31 = vrot.slane %v2020_v49, 4  ;;  %v2040_v13 = vadd.f32 %v2039_v7, %v2038_v16 }
 0x423   :  { %v2022_v45 = vadd.f32 %v2021_v31, %v2020_v49  ;;  %v2041_v62 = vrot.slane %v2040_v13, 4 }
 0x425   :  { %v2023_v11 = vrot.slane %v2022_v45, 2  ;;  %v2042_v25 = vadd.f32 %v2041_v62, %v2040_v13 }
 0x427   :  { %v2024_v59 = vadd.f32 %v2023_v11, %v2022_v45  ;;  %v2043_v17 = vrot.slane %v2042_v25, 2 }
 0x429   :  { %v2025_v2 = vrot.slane %v2024_v59, 1  ;;  %v2044_v56 = vadd.f32 %v2043_v17, %v2042_v25 }
 0x42b   :  { %v2026_v29 = vadd.f32 %v2025_v2, %v2024_v59  ;;  %v2045_v39 = vrot.slane %v2044_v56, 1 }
 0x42d   :  { %v2027_v47 = vadd.f32 %v2026_v29, %v2018_v23  ;;  %v2046_v37 = vadd.f32 %v2045_v39, %v2044_v56 }
 0x42f   :  { %2959 = vmatmul.mubr.f32.vlgmr.msra.gmra.mxu0 %v2027_v47  ;;  %v2047_v4 = vadd.f32 %v2046_v37, %v2036_v52 }
 0x431   :  { %2994 = vmatmul.mubr.f32.vlgmr.msra.gmra.mxu1 %v2047_v4 }
 0x4ef   :  { %v2114_v1 = vpop.f32.mrf.mxu0 }
 0x4f0   :  { %v2118_v54 = vmul.f32 0.001953125, %v2114_v1 }
 0x4f1   :  { %v2960_v9 = vpop.f32.mrf.mxu0  ;;  %v2185_v8 = vpop.f32.mrf.mxu1 }
 0x4f2   :  { %v2190_v57 = vmul.f32 %v2118_v54, %v2118_v54  ;;  %v2189_v14 = vmul.f32 0.001953125, %v2185_v8 }
 0x4f3   :  { %v2995_v61 = vpop.f32.mrf.mxu1 }
 0x4f4   :  { %v2191_v15 = vsub.f32 %v2189_v14, %v2190_v57 }
 0x4f6   :  { %v2194_v19 = vadd.f32 1e-05, %v2191_v15 }
 0x4f8   :  { %3001 = vrsqrt.f32 %v2194_v19 }
 0x505   :  { %v3002_v27 = vpop.eup %3001 }
 0x506   :  { %v2196_v35 = vmul.f32 %v3002_v27, %v2192_v21 }
 0x508   :  { %v2197_v50 = vmul.f32 %v2196_v35, %v2118_v54  ;;  %v2202_v22 = vrot.slane %v2196_v35, %v4318_v55 }
 0x50a   :  { %v2198_v24 = vsub.f32 %v2193_v41, %v2197_v50  ;;  %v2203_v26 = vmul.f32 %v2202_v22, %v4669_v30  ;;  %v2204_v34 = vmul.f32 %v2202_v22, %v4671_v32  ;;  %v2215_v36 = vmul.f32 %v2202_v22, %v2010_v20 }
 0x50b   :  { %v2216_v38 = vmul.f32 %v2202_v22, %v2011_v6 }
 0x50c   :  { %v2208_v12 = vrot.slane %v2198_v24, %v4318_v55 }
 0x50e   :  { %v2209_v40 = vadd.f32 %v2208_v12, %v2203_v26  ;;  %v2210_v42 = vadd.f32 %v2208_v12, %v2204_v34  ;;  %v2217_v44 = vadd.f32 %v2215_v36, %v2208_v12  ;;  %v2218_v46 = vadd.f32 %v2216_v38, %v2208_v12 }
 0x510   :  { %v2211_v48 = vmax.f32 %v2209_v40, 0.0  ;;  %v2212_v51 = vmax.f32 %v2210_v42, 0.0  ;;  %v2219_v58 = vmax.f32 %v2217_v44, 0.0  ;;  %v2220_v18 = vmax.f32 %v2218_v46, 0.0 }
 0x512   :  { %2213 = vst [vmem:[%s4707_s6] sm:$0xff] %v2211_v48  ;;  %2214 = vst [vmem:[%s4707_s6 + $0x8] sm:$0xff] %v2212_v51 }
 0x513   :  { %2221 = vst [vmem:[%s4707_s6 + $0x10] sm:$0xff] %v2219_v58  ;;  %2222 = vst [vmem:[%s4707_s6 + $0x18] sm:$0xff] %v2220_v18 }

</bundles_post_ra>
